<compile_context>
chip_gen: v7x
topology: tpu7x:2x2x1
jax: 0.10.0
libtpu: 0.0.40
codegen_flags: <defaults>
</compile_context>

<pallas_src>
import jax
import jax.numpy as jnp
from jax import lax
from jax.experimental import pallas as pl
from jax.experimental.pallas import tpu as pltpu

# ----------------------------- model config (small, synthetic) -----------------------------
VOCAB = 128
MAX_POS = 64
TYPE_VOCAB = 2
HIDDEN = 32
NUM_HEADS = 4
HEAD_DIM = HIDDEN // NUM_HEADS
INTERMEDIATE = 64
NUM_LAYERS = 2
LN_EPS = 1e-12
DTYPE = jnp.float32            # activations / LN / softmax math (v5e-safe)
MATMUL_DTYPE = jnp.bfloat16    # MXU operand dtype (f32 accumulation)

# ----------------------------- packed-slab layout (static offsets) -------------------------
SLAB_COLS = 3 * HIDDEN                                   # 96 lanes (lane-dense)
# bf16 weight slab: per layer [Wqkv (H,3H); Wo (H,H); Wi (H,I); Wo2 (I,H)], then pooler W.
W_ROWS_PER_LAYER = 3 * HIDDEN + INTERMEDIATE             # 160 (multiple of 16: bf16 sublane tile)
OFF_WQKV = 0
OFF_WO = HIDDEN
OFF_WI = 2 * HIDDEN
OFF_WO2 = 3 * HIDDEN
W_POOL_ROW = NUM_LAYERS * W_ROWS_PER_LAYER               # 320
W_SLAB_ROWS = W_POOL_ROW + HIDDEN                        # 352

# f32 bias / LayerNorm slab: 3 global rows, then 8 rows per layer.
ROW_EMB_LN_G, ROW_EMB_LN_B, ROW_POOL_B = 0, 1, 2
B_GLOBAL_ROWS = 3
B_ROWS_PER_LAYER = 8                                     # bqkv, bo, ln1_g, ln1_b, bi, bo2, ln2_g, ln2_b
B_SLAB_ROWS = B_GLOBAL_ROWS + NUM_LAYERS * B_ROWS_PER_LAYER


# ----------------------------- the fused encoder kernel ------------------------------------
def _scibert_encoder_kernel(x_ref, mask_ref, w_ref, b_ref, out_ref):
    # x_ref: (1, S, H) f32   mask_ref: (1, 1, S) f32   w_ref: (352, 96) bf16
    # b_ref: (19, 96) f32    out_ref: (1, 1, H) f32
    S = x_ref.shape[1]
    H, NH, HD, I, L = HIDDEN, NUM_HEADS, HEAD_DIM, INTERMEDIATE, NUM_LAYERS

    def mm(a, w):
        # bf16 MXU operands, f32 accumulation.
        return jnp.dot(a.astype(MATMUL_DTYPE), w, preferred_element_type=jnp.float32)

    def ln(v, g, b):
        # One-pass stats: E[x], E[x^2] (halves the cross-lane XLU reductions).
        mu = jnp.mean(v, axis=-1, keepdims=True)
        ms = jnp.mean(v * v, axis=-1, keepdims=True)
        var = ms - mu * mu
        return (v - mu) * lax.rsqrt(var + LN_EPS) * g + b

    def brow(r, n):
        # One f32 bias/LN row (static row index, static lane slice).
        return b_ref[r:r + 1, 0:n]                                   # (1, n)

    add_mask = mask_ref[0]                                           # (1, S), 0 / -1e9

    # Embedding LayerNorm.
    h = ln(x_ref[0].astype(jnp.float32), brow(ROW_EMB_LN_G, H), brow(ROW_EMB_LN_B, H))  # (S, H)

    for l in range(L):
        wbase = l * W_ROWS_PER_LAYER
        bbase = B_GLOBAL_ROWS + l * B_ROWS_PER_LAYER
        wqkv = w_ref[wbase + OFF_WQKV: wbase + OFF_WQKV + H, 0:3 * H]    # (H, 3H) bf16
        wo   = w_ref[wbase + OFF_WO:   wbase + OFF_WO + H,   0:H]        # (H, H)
        wi   = w_ref[wbase + OFF_WI:   wbase + OFF_WI + H,   0:I]        # (H, I)
        wo2  = w_ref[wbase + OFF_WO2:  wbase + OFF_WO2 + I,  0:H]        # (I, H)

        # ---------------- self-attention: one fused QKV matmul, lane-sliced per head -------
        qkv = mm(h, wqkv) + brow(bbase + 0, 3 * H)                       # (S, 3H) f32
        qkv_b = qkv.astype(MATMUL_DTYPE)                                 # bf16 MXU operands
        ctx_heads = []
        for hd in range(NH):
            q = qkv_b[:, hd * HD:(hd + 1) * HD]                          # (S, HD); scale folded in Wq
            k = qkv_b[:, H + hd * HD:H + (hd + 1) * HD]                  # (S, HD)
            v = qkv_b[:, 2 * H + hd * HD:2 * H + (hd + 1) * HD]          # (S, HD)
            # q @ k^T without an explicit XLU transpose (contract last dims).
            s = lax.dot_general(q, k, dimension_numbers=(((1,), (1,)), ((), ())),
                                preferred_element_type=jnp.float32)      # (S, S)
            s = s + add_mask
            s = s - jnp.max(s, axis=-1, keepdims=True)
            p = jnp.exp(s)
            # Max-subtraction guarantees sum >= 1, so approx reciprocal (EUP) is safe.
            p = p * pl.reciprocal(jnp.sum(p, axis=-1, keepdims=True), approx=True)
            ctx_heads.append(jnp.dot(p.astype(MATMUL_DTYPE), v,
                                     preferred_element_type=jnp.float32))  # (S, HD)
        # Head-merge fused into ONE out-projection matmul.
        ctx = jnp.concatenate(ctx_heads, axis=-1)                        # (S, H)
        attn_out = mm(ctx, wo) + brow(bbase + 1, H)
        h = ln(h + attn_out, brow(bbase + 2, H), brow(bbase + 3, H))

        # ---------------- feed-forward ------------------------------------------------------
        # NOTE: tanh-approx GELU (HF BERT uses exact erf GELU; difference ~1e-3).
        inter = jax.nn.gelu(mm(h, wi) + brow(bbase + 4, I), approximate=True)   # (S, I)
        ffn = mm(inter, wo2) + brow(bbase + 5, H)
        h = ln(h + ffn, brow(bbase + 6, H), brow(bbase + 7, H))

    # ---------------- pooler: tanh(dense(hidden[:, 0])) -----------------------------------
    pool_w = w_ref[W_POOL_ROW:W_POOL_ROW + H, 0:H]                       # (H, H) bf16
    cls = h[0:1, :]                                                      # (1, H)
    pooled = jnp.tanh(mm(cls, pool_w) + brow(ROW_POOL_B, H))             # (1, H)
    out_ref[0] = pooled.astype(out_ref.dtype)


# ----------------------------- forward wrapper (glue in JAX) -------------------------------
@jax.jit
def scibert_encoder_forward(packed, input_ids, attention_mask):
    """ScibertEncoder.forward: BERT pooler_output (Dropout(0.1) is identity in eval mode)."""
    B, S = input_ids.shape

    # Embeddings (gather is glue; token_type_ids are all zeros as in the PyTorch module).
    we = packed["word_emb"][input_ids]                     # (B, S, H)
    pe = packed["pos_emb"][:S][None]                       # (1, S, H)
    te = packed["type_emb"][0][None, None]                 # (1, 1, H)   (type id 0 everywhere)
    x = (we + pe + te).astype(jnp.float32)                 # (B, S, H)

    # Additive attention mask over keys: 0 for valid, -1e9 for padding.
    add_mask = ((1.0 - attention_mask.astype(jnp.float32)) * jnp.float32(-1e9)).reshape(B, 1, S)

    w_slab, b_slab = packed["w_slab"], packed["b_slab"]
    out = pl.pallas_call(
        _scibert_encoder_kernel,
        out_shape=jax.ShapeDtypeStruct((B, 1, HIDDEN), jnp.float32),
        grid=(B,),
        in_specs=[
            pl.BlockSpec((1, S, HIDDEN), lambda b: (b, 0, 0)),
            pl.BlockSpec((1, 1, S), lambda b: (b, 0, 0)),
            pl.BlockSpec(w_slab.shape, lambda b: (0, 0)),   # weights resident across the grid
            pl.BlockSpec(b_slab.shape, lambda b: (0, 0)),
        ],
        out_specs=pl.BlockSpec((1, 1, HIDDEN), lambda b: (b, 0, 0)),
        # Batch axis is parallel -> v7x shards the two batch elements across its 2 TCs.
        compiler_params=pltpu.CompilerParams(dimension_semantics=("parallel",)),
    )(x, add_mask, w_slab, b_slab)

    # TODO(synk): nn.Dropout(0.1) is identity at inference; training-mode dropout would use
    # pltpu.prng_seed / prng_random_bits inside the kernel.
    return out.reshape(B, HIDDEN)


# ----------------------------- parameter construction --------------------------------------
def init_params(key):
    keys = iter(jax.random.split(key, 64))

    def dense(k, shape):
        return jax.random.normal(k, shape, DTYPE) * 0.02

    params = {
        "word_emb": dense(next(keys), (VOCAB, HIDDEN)),
        "pos_emb": dense(next(keys), (MAX_POS, HIDDEN)),
        "type_emb": dense(next(keys), (TYPE_VOCAB, HIDDEN)),
        "emb_ln_g": jnp.ones((HIDDEN,), DTYPE),
        "emb_ln_b": jnp.zeros((HIDDEN,), DTYPE),
        "pooler_w": dense(next(keys), (HIDDEN, HIDDEN)),
        "pooler_b": jnp.zeros((HIDDEN,), DTYPE),
        "layers": [],
    }
    for _ in range(NUM_LAYERS):
        params["layers"].append({
            "wq": dense(next(keys), (HIDDEN, HIDDEN)), "bq": jnp.zeros((HIDDEN,), DTYPE),
            "wk": dense(next(keys), (HIDDEN, HIDDEN)), "bk": jnp.zeros((HIDDEN,), DTYPE),
            "wv": dense(next(keys), (HIDDEN, HIDDEN)), "bv": jnp.zeros((HIDDEN,), DTYPE),
            "wo": dense(next(keys), (HIDDEN, HIDDEN)), "bo": jnp.zeros((HIDDEN,), DTYPE),
            "ln1_g": jnp.ones((HIDDEN,), DTYPE), "ln1_b": jnp.zeros((HIDDEN,), DTYPE),
            "wi": dense(next(keys), (HIDDEN, INTERMEDIATE)), "bi": jnp.zeros((INTERMEDIATE,), DTYPE),
            "wo2": dense(next(keys), (INTERMEDIATE, HIDDEN)), "bo2": jnp.zeros((HIDDEN,), DTYPE),
            "ln2_g": jnp.ones((HIDDEN,), DTYPE), "ln2_b": jnp.zeros((HIDDEN,), DTYPE),
        })
    return params


def pack_params(params):
    """Repack conventional BERT weights into two lane-dense kernel slabs:
       * bf16 weight slab (W_SLAB_ROWS, 96): per layer [Wqkv; Wo; Wi; Wo2], then pooler W.
         1/sqrt(head_dim) is folded into Wq / bq.
       * f32 bias/LN slab (B_SLAB_ROWS, 96): one row per bias / LN vector."""
    H, I, HD, L = HIDDEN, INTERMEDIATE, HEAD_DIM, NUM_LAYERS
    scale = 1.0 / float(HD) ** 0.5

    w_slab = jnp.zeros((W_SLAB_ROWS, SLAB_COLS), jnp.float32)
    b_slab = jnp.zeros((B_SLAB_ROWS, SLAB_COLS), jnp.float32)

    def put_w(slab, row, w):
        r, c = w.shape
        return slab.at[row:row + r, 0:c].set(w.astype(jnp.float32))

    def put_b(slab, row, b):
        return slab.at[row, 0:b.shape[0]].set(b.astype(jnp.float32))

    b_slab = put_b(b_slab, ROW_EMB_LN_G, params["emb_ln_g"])
    b_slab = put_b(b_slab, ROW_EMB_LN_B, params["emb_ln_b"])
    b_slab = put_b(b_slab, ROW_POOL_B, params["pooler_b"])

    for l, lp in enumerate(params["layers"]):
        wbase = l * W_ROWS_PER_LAYER
        bbase = B_GLOBAL_ROWS + l * B_ROWS_PER_LAYER
        wqkv = jnp.concatenate([lp["wq"] * scale, lp["wk"], lp["wv"]], axis=1)   # (H, 3H)
        bqkv = jnp.concatenate([lp["bq"] * scale, lp["bk"], lp["bv"]], axis=0)   # (3H,)
        w_slab = put_w(w_slab, wbase + OFF_WQKV, wqkv)
        w_slab = put_w(w_slab, wbase + OFF_WO, lp["wo"])
        w_slab = put_w(w_slab, wbase + OFF_WI, lp["wi"])
        w_slab = put_w(w_slab, wbase + OFF_WO2, lp["wo2"])
        b_slab = put_b(b_slab, bbase + 0, bqkv)
        b_slab = put_b(b_slab, bbase + 1, lp["bo"])
        b_slab = put_b(b_slab, bbase + 2, lp["ln1_g"])
        b_slab = put_b(b_slab, bbase + 3, lp["ln1_b"])
        b_slab = put_b(b_slab, bbase + 4, lp["bi"])
        b_slab = put_b(b_slab, bbase + 5, lp["bo2"])
        b_slab = put_b(b_slab, bbase + 6, lp["ln2_g"])
        b_slab = put_b(b_slab, bbase + 7, lp["ln2_b"])

    w_slab = put_w(w_slab, W_POOL_ROW, params["pooler_w"])

    return {
        "word_emb": params["word_emb"].astype(DTYPE),
        "pos_emb": params["pos_emb"].astype(DTYPE),
        "type_emb": params["type_emb"].astype(DTYPE),
        "w_slab": w_slab.astype(MATMUL_DTYPE),
        "b_slab": b_slab.astype(DTYPE),
    }


if __name__ == "__main__":
    # TODO(synk): the HuggingFace tokenizer (tokenizer_text/encode_text) has no Pallas
    # equivalent; we feed synthetic token ids directly, matching forward()'s signature.
    key = jax.random.PRNGKey(0)
    k_params, k_ids = jax.random.split(key)

    B, S = 2, 8
    params = init_params(k_params)
    packed = pack_params(params)
    input_ids = jax.random.randint(k_ids, (B, S), 0, VOCAB, dtype=jnp.int32)
    attention_mask = jnp.array([[1] * S, [1] * (S - 2) + [0] * 2], dtype=jnp.int32)

    pooled = scibert_encoder_forward(packed, input_ids, attention_mask)
    pooled = jax.block_until_ready(pooled)
    assert pooled.shape == (B, HIDDEN) and pooled.dtype == jnp.float32
    assert bool(jnp.all(jnp.isfinite(pooled)))
    print("KERNEL_OK")
</pallas_src>

<mosaic_0001>
module attributes {stable_mosaic.version = 11 : i64} {
  func.func @_scibert_encoder_kernel(%arg0: i32, %arg1: memref<1x8x32xf32, #tpu.memory_space<vmem>>, %arg2: memref<1x1x8xf32, #tpu.memory_space<vmem>>, %arg3: memref<352x96xbf16, #tpu.memory_space<vmem>>, %arg4: memref<19x96xf32, #tpu.memory_space<vmem>>, %arg5: memref<1x1x32xf32, #tpu.memory_space<vmem>>) attributes {dimension_semantics = [#tpu.dimension_semantics<parallel>], iteration_bounds = array<i64: 2>, scalar_prefetch = 0 : i64, scratch_operands = 0 : i64, tpu.core_type = #tpu.core_type<tc>, window_params = [{transform_indices = @transform_0, window_bounds = array<i64: 1, 8, 32>}, {transform_indices = @transform_1, window_bounds = array<i64: 1, 1, 8>}, {pipeline_mode = #tpu.pipeline_mode<synchronous>, transform_indices = @transform_2, window_bounds = array<i64: 352, 96>}, {pipeline_mode = #tpu.pipeline_mode<synchronous>, transform_indices = @transform_3, window_bounds = array<i64: 19, 96>}, {transform_indices = @transform_4, window_bounds = array<i64: 1, 1, 32>}]} {
    %c0 = arith.constant 0 : index
    %c0_0 = arith.constant 0 : index
    %c0_1 = arith.constant 0 : index
    %0 = vector.load %arg2[%c0, %c0_0, %c0_1] : memref<1x1x8xf32, #tpu.memory_space<vmem>>, vector<1x1x8xf32>
    %1 = vector.shape_cast %0 : vector<1x1x8xf32> to vector<1x8xf32>
    %c0_2 = arith.constant 0 : index
    %c0_3 = arith.constant 0 : index
    %c0_4 = arith.constant 0 : index
    %2 = vector.load %arg1[%c0_2, %c0_3, %c0_4] : memref<1x8x32xf32, #tpu.memory_space<vmem>>, vector<1x8x32xf32>
    %3 = vector.shape_cast %2 : vector<1x8x32xf32> to vector<8x32xf32>
    %c0_5 = arith.constant 0 : index
    %c0_6 = arith.constant 0 : index
    %4 = vector.load %arg4[%c0_5, %c0_6] : memref<19x96xf32, #tpu.memory_space<vmem>>, vector<1x32xf32>
    %c1 = arith.constant 1 : index
    %c0_7 = arith.constant 0 : index
    %5 = vector.load %arg4[%c1, %c0_7] : memref<19x96xf32, #tpu.memory_space<vmem>>, vector<1x32xf32>
    %cst = arith.constant dense<0.000000e+00> : vector<8xf32>
    %6 = vector.multi_reduction <add>, %3, %cst [1] : vector<8x32xf32> to vector<8xf32>
    %7 = vector.shape_cast %6 : vector<8xf32> to vector<8x1xf32>
    %cst_8 = arith.constant 3.200000e+01 : f32
    %8 = vector.broadcast %cst_8 : f32 to vector<8x1xf32>
    %9 = arith.divf %7, %8 : vector<8x1xf32>
    %10 = arith.mulf %3, %3 : vector<8x32xf32>
    %cst_9 = arith.constant dense<0.000000e+00> : vector<8xf32>
    %11 = vector.multi_reduction <add>, %10, %cst_9 [1] : vector<8x32xf32> to vector<8xf32>
    %12 = vector.shape_cast %11 : vector<8xf32> to vector<8x1xf32>
    %cst_10 = arith.constant 3.200000e+01 : f32
    %13 = vector.broadcast %cst_10 : f32 to vector<8x1xf32>
    %14 = arith.divf %12, %13 : vector<8x1xf32>
    %15 = arith.mulf %9, %9 : vector<8x1xf32>
    %16 = arith.subf %14, %15 : vector<8x1xf32>
    %17 = vector.broadcast %9 : vector<8x1xf32> to vector<8x32xf32>
    %18 = arith.subf %3, %17 : vector<8x32xf32>
    %cst_11 = arith.constant 9.99999996E-13 : f32
    %19 = vector.broadcast %cst_11 : f32 to vector<8x1xf32>
    %20 = arith.addf %16, %19 : vector<8x1xf32>
    %21 = math.rsqrt %20 : vector<8x1xf32>
    %22 = vector.broadcast %21 : vector<8x1xf32> to vector<8x32xf32>
    %23 = arith.mulf %18, %22 : vector<8x32xf32>
    %24 = vector.broadcast %4 : vector<1x32xf32> to vector<8x32xf32>
    %25 = arith.mulf %23, %24 : vector<8x32xf32>
    %26 = vector.broadcast %5 : vector<1x32xf32> to vector<8x32xf32>
    %27 = arith.addf %25, %26 : vector<8x32xf32>
    %c0_12 = arith.constant 0 : index
    %c0_13 = arith.constant 0 : index
    %28 = vector.load %arg3[%c0_12, %c0_13] : memref<352x96xbf16, #tpu.memory_space<vmem>>, vector<32x96xbf16>
    %c32 = arith.constant 32 : index
    %c0_14 = arith.constant 0 : index
    %29 = vector.load %arg3[%c32, %c0_14] : memref<352x96xbf16, #tpu.memory_space<vmem>>, vector<32x32xbf16>
    %c64 = arith.constant 64 : index
    %c0_15 = arith.constant 0 : index
    %30 = vector.load %arg3[%c64, %c0_15] : memref<352x96xbf16, #tpu.memory_space<vmem>>, vector<32x64xbf16>
    %c96 = arith.constant 96 : index
    %c0_16 = arith.constant 0 : index
    %31 = vector.load %arg3[%c96, %c0_16] : memref<352x96xbf16, #tpu.memory_space<vmem>>, vector<64x32xbf16>
    %32 = arith.truncf %27 : vector<8x32xf32> to vector<8x32xbf16>
    %cst_17 = arith.constant dense<0.000000e+00> : vector<8x96xf32>
    %33 = tpu.matmul %32, %28, %cst_17 {dimension_numbers = #tpu.dot_dimension_numbers<[1], [0], [0], [1], [0, 0, 1, 1], [], []>} : vector<8x32xbf16>, vector<32x96xbf16>, vector<8x96xf32> -> vector<8x96xf32>
    %c3 = arith.constant 3 : index
    %c0_18 = arith.constant 0 : index
    %34 = vector.load %arg4[%c3, %c0_18] : memref<19x96xf32, #tpu.memory_space<vmem>>, vector<1x96xf32>
    %35 = vector.broadcast %34 : vector<1x96xf32> to vector<8x96xf32>
    %36 = arith.addf %33, %35 : vector<8x96xf32>
    %37 = arith.truncf %36 : vector<8x96xf32> to vector<8x96xbf16>
    %38 = vector.extract_strided_slice %37 {offsets = [0, 0], sizes = [8, 8], strides = [1, 1]} : vector<8x96xbf16> to vector<8x8xbf16>
    %39 = vector.extract_strided_slice %37 {offsets = [0, 32], sizes = [8, 8], strides = [1, 1]} : vector<8x96xbf16> to vector<8x8xbf16>
    %40 = vector.extract_strided_slice %37 {offsets = [0, 64], sizes = [8, 8], strides = [1, 1]} : vector<8x96xbf16> to vector<8x8xbf16>
    %cst_19 = arith.constant dense<0.000000e+00> : vector<8x8xf32>
    %41 = tpu.matmul %38, %39, %cst_19 {dimension_numbers = #tpu.dot_dimension_numbers<[1], [1], [0], [0], [0, 0, 1, 0], [], []>} : vector<8x8xbf16>, vector<8x8xbf16>, vector<8x8xf32> -> vector<8x8xf32>
    %42 = vector.broadcast %1 : vector<1x8xf32> to vector<8x8xf32>
    %43 = arith.addf %41, %42 : vector<8x8xf32>
    %cst_20 = arith.constant dense<0xFF800000> : vector<8xf32>
    %44 = vector.multi_reduction <maximumf>, %43, %cst_20 [1] : vector<8x8xf32> to vector<8xf32>
    %45 = vector.shape_cast %44 : vector<8xf32> to vector<8x1xf32>
    %46 = vector.broadcast %45 : vector<8x1xf32> to vector<8x8xf32>
    %47 = arith.subf %43, %46 : vector<8x8xf32>
    %48 = math.exp %47 : vector<8x8xf32>
    %cst_21 = arith.constant dense<0.000000e+00> : vector<8xf32>
    %49 = vector.multi_reduction <add>, %48, %cst_21 [1] : vector<8x8xf32> to vector<8xf32>
    %50 = vector.shape_cast %49 : vector<8xf32> to vector<8x1xf32>
    %51 = tpu.reciprocal %50 {approx = true} : vector<8x1xf32> -> vector<8x1xf32>
    %52 = vector.broadcast %51 : vector<8x1xf32> to vector<8x8xf32>
    %53 = arith.mulf %48, %52 : vector<8x8xf32>
    %54 = arith.truncf %53 : vector<8x8xf32> to vector<8x8xbf16>
    %cst_22 = arith.constant dense<0.000000e+00> : vector<8x8xf32>
    %55 = tpu.matmul %54, %40, %cst_22 {dimension_numbers = #tpu.dot_dimension_numbers<[1], [0], [0], [1], [0, 0, 1, 1], [], []>} : vector<8x8xbf16>, vector<8x8xbf16>, vector<8x8xf32> -> vector<8x8xf32>
    %56 = vector.extract_strided_slice %37 {offsets = [0, 8], sizes = [8, 8], strides = [1, 1]} : vector<8x96xbf16> to vector<8x8xbf16>
    %57 = vector.extract_strided_slice %37 {offsets = [0, 40], sizes = [8, 8], strides = [1, 1]} : vector<8x96xbf16> to vector<8x8xbf16>
    %58 = vector.extract_strided_slice %37 {offsets = [0, 72], sizes = [8, 8], strides = [1, 1]} : vector<8x96xbf16> to vector<8x8xbf16>
    %cst_23 = arith.constant dense<0.000000e+00> : vector<8x8xf32>
    %59 = tpu.matmul %56, %57, %cst_23 {dimension_numbers = #tpu.dot_dimension_numbers<[1], [1], [0], [0], [0, 0, 1, 0], [], []>} : vector<8x8xbf16>, vector<8x8xbf16>, vector<8x8xf32> -> vector<8x8xf32>
    %60 = vector.broadcast %1 : vector<1x8xf32> to vector<8x8xf32>
    %61 = arith.addf %59, %60 : vector<8x8xf32>
    %cst_24 = arith.constant dense<0xFF800000> : vector<8xf32>
    %62 = vector.multi_reduction <maximumf>, %61, %cst_24 [1] : vector<8x8xf32> to vector<8xf32>
    %63 = vector.shape_cast %62 : vector<8xf32> to vector<8x1xf32>
    %64 = vector.broadcast %63 : vector<8x1xf32> to vector<8x8xf32>
    %65 = arith.subf %61, %64 : vector<8x8xf32>
    %66 = math.exp %65 : vector<8x8xf32>
    %cst_25 = arith.constant dense<0.000000e+00> : vector<8xf32>
    %67 = vector.multi_reduction <add>, %66, %cst_25 [1] : vector<8x8xf32> to vector<8xf32>
    %68 = vector.shape_cast %67 : vector<8xf32> to vector<8x1xf32>
    %69 = tpu.reciprocal %68 {approx = true} : vector<8x1xf32> -> vector<8x1xf32>
    %70 = vector.broadcast %69 : vector<8x1xf32> to vector<8x8xf32>
    %71 = arith.mulf %66, %70 : vector<8x8xf32>
    %72 = arith.truncf %71 : vector<8x8xf32> to vector<8x8xbf16>
    %cst_26 = arith.constant dense<0.000000e+00> : vector<8x8xf32>
    %73 = tpu.matmul %72, %58, %cst_26 {dimension_numbers = #tpu.dot_dimension_numbers<[1], [0], [0], [1], [0, 0, 1, 1], [], []>} : vector<8x8xbf16>, vector<8x8xbf16>, vector<8x8xf32> -> vector<8x8xf32>
    %74 = vector.extract_strided_slice %37 {offsets = [0, 16], sizes = [8, 8], strides = [1, 1]} : vector<8x96xbf16> to vector<8x8xbf16>
    %75 = vector.extract_strided_slice %37 {offsets = [0, 48], sizes = [8, 8], strides = [1, 1]} : vector<8x96xbf16> to vector<8x8xbf16>
    %76 = vector.extract_strided_slice %37 {offsets = [0, 80], sizes = [8, 8], strides = [1, 1]} : vector<8x96xbf16> to vector<8x8xbf16>
    %cst_27 = arith.constant dense<0.000000e+00> : vector<8x8xf32>
    %77 = tpu.matmul %74, %75, %cst_27 {dimension_numbers = #tpu.dot_dimension_numbers<[1], [1], [0], [0], [0, 0, 1, 0], [], []>} : vector<8x8xbf16>, vector<8x8xbf16>, vector<8x8xf32> -> vector<8x8xf32>
    %78 = vector.broadcast %1 : vector<1x8xf32> to vector<8x8xf32>
    %79 = arith.addf %77, %78 : vector<8x8xf32>
    %cst_28 = arith.constant dense<0xFF800000> : vector<8xf32>
    %80 = vector.multi_reduction <maximumf>, %79, %cst_28 [1] : vector<8x8xf32> to vector<8xf32>
    %81 = vector.shape_cast %80 : vector<8xf32> to vector<8x1xf32>
    %82 = vector.broadcast %81 : vector<8x1xf32> to vector<8x8xf32>
    %83 = arith.subf %79, %82 : vector<8x8xf32>
    %84 = math.exp %83 : vector<8x8xf32>
    %cst_29 = arith.constant dense<0.000000e+00> : vector<8xf32>
    %85 = vector.multi_reduction <add>, %84, %cst_29 [1] : vector<8x8xf32> to vector<8xf32>
    %86 = vector.shape_cast %85 : vector<8xf32> to vector<8x1xf32>
    %87 = tpu.reciprocal %86 {approx = true} : vector<8x1xf32> -> vector<8x1xf32>
    %88 = vector.broadcast %87 : vector<8x1xf32> to vector<8x8xf32>
    %89 = arith.mulf %84, %88 : vector<8x8xf32>
    %90 = arith.truncf %89 : vector<8x8xf32> to vector<8x8xbf16>
    %cst_30 = arith.constant dense<0.000000e+00> : vector<8x8xf32>
    %91 = tpu.matmul %90, %76, %cst_30 {dimension_numbers = #tpu.dot_dimension_numbers<[1], [0], [0], [1], [0, 0, 1, 1], [], []>} : vector<8x8xbf16>, vector<8x8xbf16>, vector<8x8xf32> -> vector<8x8xf32>
    %92 = vector.extract_strided_slice %37 {offsets = [0, 24], sizes = [8, 8], strides = [1, 1]} : vector<8x96xbf16> to vector<8x8xbf16>
    %93 = vector.extract_strided_slice %37 {offsets = [0, 56], sizes = [8, 8], strides = [1, 1]} : vector<8x96xbf16> to vector<8x8xbf16>
    %94 = vector.extract_strided_slice %37 {offsets = [0, 88], sizes = [8, 8], strides = [1, 1]} : vector<8x96xbf16> to vector<8x8xbf16>
    %cst_31 = arith.constant dense<0.000000e+00> : vector<8x8xf32>
    %95 = tpu.matmul %92, %93, %cst_31 {dimension_numbers = #tpu.dot_dimension_numbers<[1], [1], [0], [0], [0, 0, 1, 0], [], []>} : vector<8x8xbf16>, vector<8x8xbf16>, vector<8x8xf32> -> vector<8x8xf32>
    %96 = vector.broadcast %1 : vector<1x8xf32> to vector<8x8xf32>
    %97 = arith.addf %95, %96 : vector<8x8xf32>
    %cst_32 = arith.constant dense<0xFF800000> : vector<8xf32>
    %98 = vector.multi_reduction <maximumf>, %97, %cst_32 [1] : vector<8x8xf32> to vector<8xf32>
    %99 = vector.shape_cast %98 : vector<8xf32> to vector<8x1xf32>
    %100 = vector.broadcast %99 : vector<8x1xf32> to vector<8x8xf32>
    %101 = arith.subf %97, %100 : vector<8x8xf32>
    %102 = math.exp %101 : vector<8x8xf32>
    %cst_33 = arith.constant dense<0.000000e+00> : vector<8xf32>
    %103 = vector.multi_reduction <add>, %102, %cst_33 [1] : vector<8x8xf32> to vector<8xf32>
    %104 = vector.shape_cast %103 : vector<8xf32> to vector<8x1xf32>
    %105 = tpu.reciprocal %104 {approx = true} : vector<8x1xf32> -> vector<8x1xf32>
    %106 = vector.broadcast %105 : vector<8x1xf32> to vector<8x8xf32>
    %107 = arith.mulf %102, %106 : vector<8x8xf32>
    %108 = arith.truncf %107 : vector<8x8xf32> to vector<8x8xbf16>
    %cst_34 = arith.constant dense<0.000000e+00> : vector<8x8xf32>
    %109 = tpu.matmul %108, %94, %cst_34 {dimension_numbers = #tpu.dot_dimension_numbers<[1], [0], [0], [1], [0, 0, 1, 1], [], []>} : vector<8x8xbf16>, vector<8x8xbf16>, vector<8x8xf32> -> vector<8x8xf32>
    %110 = tpu.concatenate %55, %73, %91, %109 in 1 : vector<8x8xf32>, vector<8x8xf32>, vector<8x8xf32>, vector<8x8xf32> -> vector<8x32xf32>
    %111 = arith.truncf %110 : vector<8x32xf32> to vector<8x32xbf16>
    %cst_35 = arith.constant dense<0.000000e+00> : vector<8x32xf32>
    %112 = tpu.matmul %111, %29, %cst_35 {dimension_numbers = #tpu.dot_dimension_numbers<[1], [0], [0], [1], [0, 0, 1, 1], [], []>} : vector<8x32xbf16>, vector<32x32xbf16>, vector<8x32xf32> -> vector<8x32xf32>
    %c4 = arith.constant 4 : index
    %c0_36 = arith.constant 0 : index
    %113 = vector.load %arg4[%c4, %c0_36] : memref<19x96xf32, #tpu.memory_space<vmem>>, vector<1x32xf32>
    %114 = vector.broadcast %113 : vector<1x32xf32> to vector<8x32xf32>
    %115 = arith.addf %112, %114 : vector<8x32xf32>
    %116 = arith.addf %27, %115 : vector<8x32xf32>
    %c5 = arith.constant 5 : index
    %c0_37 = arith.constant 0 : index
    %117 = vector.load %arg4[%c5, %c0_37] : memref<19x96xf32, #tpu.memory_space<vmem>>, vector<1x32xf32>
    %c6 = arith.constant 6 : index
    %c0_38 = arith.constant 0 : index
    %118 = vector.load %arg4[%c6, %c0_38] : memref<19x96xf32, #tpu.memory_space<vmem>>, vector<1x32xf32>
    %cst_39 = arith.constant dense<0.000000e+00> : vector<8xf32>
    %119 = vector.multi_reduction <add>, %116, %cst_39 [1] : vector<8x32xf32> to vector<8xf32>
    %120 = vector.shape_cast %119 : vector<8xf32> to vector<8x1xf32>
    %cst_40 = arith.constant 3.200000e+01 : f32
    %121 = vector.broadcast %cst_40 : f32 to vector<8x1xf32>
    %122 = arith.divf %120, %121 : vector<8x1xf32>
    %123 = arith.mulf %116, %116 : vector<8x32xf32>
    %cst_41 = arith.constant dense<0.000000e+00> : vector<8xf32>
    %124 = vector.multi_reduction <add>, %123, %cst_41 [1] : vector<8x32xf32> to vector<8xf32>
    %125 = vector.shape_cast %124 : vector<8xf32> to vector<8x1xf32>
    %cst_42 = arith.constant 3.200000e+01 : f32
    %126 = vector.broadcast %cst_42 : f32 to vector<8x1xf32>
    %127 = arith.divf %125, %126 : vector<8x1xf32>
    %128 = arith.mulf %122, %122 : vector<8x1xf32>
    %129 = arith.subf %127, %128 : vector<8x1xf32>
    %130 = vector.broadcast %122 : vector<8x1xf32> to vector<8x32xf32>
    %131 = arith.subf %116, %130 : vector<8x32xf32>
    %cst_43 = arith.constant 9.99999996E-13 : f32
    %132 = vector.broadcast %cst_43 : f32 to vector<8x1xf32>
    %133 = arith.addf %129, %132 : vector<8x1xf32>
    %134 = math.rsqrt %133 : vector<8x1xf32>
    %135 = vector.broadcast %134 : vector<8x1xf32> to vector<8x32xf32>
    %136 = arith.mulf %131, %135 : vector<8x32xf32>
    %137 = vector.broadcast %117 : vector<1x32xf32> to vector<8x32xf32>
    %138 = arith.mulf %136, %137 : vector<8x32xf32>
    %139 = vector.broadcast %118 : vector<1x32xf32> to vector<8x32xf32>
    %140 = arith.addf %138, %139 : vector<8x32xf32>
    %141 = arith.truncf %140 : vector<8x32xf32> to vector<8x32xbf16>
    %cst_44 = arith.constant dense<0.000000e+00> : vector<8x64xf32>
    %142 = tpu.matmul %141, %30, %cst_44 {dimension_numbers = #tpu.dot_dimension_numbers<[1], [0], [0], [1], [0, 0, 1, 1], [], []>} : vector<8x32xbf16>, vector<32x64xbf16>, vector<8x64xf32> -> vector<8x64xf32>
    %c7 = arith.constant 7 : index
    %c0_45 = arith.constant 0 : index
    %143 = vector.load %arg4[%c7, %c0_45] : memref<19x96xf32, #tpu.memory_space<vmem>>, vector<1x64xf32>
    %144 = vector.broadcast %143 : vector<1x64xf32> to vector<8x64xf32>
    %145 = arith.addf %142, %144 : vector<8x64xf32>
    %146 = arith.mulf %145, %145 : vector<8x64xf32>
    %147 = arith.mulf %145, %146 : vector<8x64xf32>
    %cst_46 = arith.constant 4.471500e-02 : f32
    %148 = vector.broadcast %cst_46 : f32 to vector<8x64xf32>
    %149 = arith.mulf %148, %147 : vector<8x64xf32>
    %150 = arith.addf %145, %149 : vector<8x64xf32>
    %cst_47 = arith.constant 0.797884583 : f32
    %151 = vector.broadcast %cst_47 : f32 to vector<8x64xf32>
    %152 = arith.mulf %151, %150 : vector<8x64xf32>
    %153 = math.tanh %152 : vector<8x64xf32>
    %cst_48 = arith.constant 1.000000e+00 : f32
    %154 = vector.broadcast %cst_48 : f32 to vector<8x64xf32>
    %155 = arith.addf %154, %153 : vector<8x64xf32>
    %cst_49 = arith.constant 5.000000e-01 : f32
    %156 = vector.broadcast %cst_49 : f32 to vector<8x64xf32>
    %157 = arith.mulf %156, %155 : vector<8x64xf32>
    %158 = arith.mulf %145, %157 : vector<8x64xf32>
    %159 = arith.truncf %158 : vector<8x64xf32> to vector<8x64xbf16>
    %cst_50 = arith.constant dense<0.000000e+00> : vector<8x32xf32>
    %160 = tpu.matmul %159, %31, %cst_50 {dimension_numbers = #tpu.dot_dimension_numbers<[1], [0], [0], [1], [0, 0, 1, 1], [], []>} : vector<8x64xbf16>, vector<64x32xbf16>, vector<8x32xf32> -> vector<8x32xf32>
    %c8 = arith.constant 8 : index
    %c0_51 = arith.constant 0 : index
    %161 = vector.load %arg4[%c8, %c0_51] : memref<19x96xf32, #tpu.memory_space<vmem>>, vector<1x32xf32>
    %162 = vector.broadcast %161 : vector<1x32xf32> to vector<8x32xf32>
    %163 = arith.addf %160, %162 : vector<8x32xf32>
    %164 = arith.addf %140, %163 : vector<8x32xf32>
    %c9 = arith.constant 9 : index
    %c0_52 = arith.constant 0 : index
    %165 = vector.load %arg4[%c9, %c0_52] : memref<19x96xf32, #tpu.memory_space<vmem>>, vector<1x32xf32>
    %c10 = arith.constant 10 : index
    %c0_53 = arith.constant 0 : index
    %166 = vector.load %arg4[%c10, %c0_53] : memref<19x96xf32, #tpu.memory_space<vmem>>, vector<1x32xf32>
    %cst_54 = arith.constant dense<0.000000e+00> : vector<8xf32>
    %167 = vector.multi_reduction <add>, %164, %cst_54 [1] : vector<8x32xf32> to vector<8xf32>
    %168 = vector.shape_cast %167 : vector<8xf32> to vector<8x1xf32>
    %cst_55 = arith.constant 3.200000e+01 : f32
    %169 = vector.broadcast %cst_55 : f32 to vector<8x1xf32>
    %170 = arith.divf %168, %169 : vector<8x1xf32>
    %171 = arith.mulf %164, %164 : vector<8x32xf32>
    %cst_56 = arith.constant dense<0.000000e+00> : vector<8xf32>
    %172 = vector.multi_reduction <add>, %171, %cst_56 [1] : vector<8x32xf32> to vector<8xf32>
    %173 = vector.shape_cast %172 : vector<8xf32> to vector<8x1xf32>
    %cst_57 = arith.constant 3.200000e+01 : f32
    %174 = vector.broadcast %cst_57 : f32 to vector<8x1xf32>
    %175 = arith.divf %173, %174 : vector<8x1xf32>
    %176 = arith.mulf %170, %170 : vector<8x1xf32>
    %177 = arith.subf %175, %176 : vector<8x1xf32>
    %178 = vector.broadcast %170 : vector<8x1xf32> to vector<8x32xf32>
    %179 = arith.subf %164, %178 : vector<8x32xf32>
    %cst_58 = arith.constant 9.99999996E-13 : f32
    %180 = vector.broadcast %cst_58 : f32 to vector<8x1xf32>
    %181 = arith.addf %177, %180 : vector<8x1xf32>
    %182 = math.rsqrt %181 : vector<8x1xf32>
    %183 = vector.broadcast %182 : vector<8x1xf32> to vector<8x32xf32>
    %184 = arith.mulf %179, %183 : vector<8x32xf32>
    %185 = vector.broadcast %165 : vector<1x32xf32> to vector<8x32xf32>
    %186 = arith.mulf %184, %185 : vector<8x32xf32>
    %187 = vector.broadcast %166 : vector<1x32xf32> to vector<8x32xf32>
    %188 = arith.addf %186, %187 : vector<8x32xf32>
    %c160 = arith.constant 160 : index
    %c0_59 = arith.constant 0 : index
    %189 = vector.load %arg3[%c160, %c0_59] : memref<352x96xbf16, #tpu.memory_space<vmem>>, vector<32x96xbf16>
    %c192 = arith.constant 192 : index
    %c0_60 = arith.constant 0 : index
    %190 = vector.load %arg3[%c192, %c0_60] : memref<352x96xbf16, #tpu.memory_space<vmem>>, vector<32x32xbf16>
    %c224 = arith.constant 224 : index
    %c0_61 = arith.constant 0 : index
    %191 = vector.load %arg3[%c224, %c0_61] : memref<352x96xbf16, #tpu.memory_space<vmem>>, vector<32x64xbf16>
    %c256 = arith.constant 256 : index
    %c0_62 = arith.constant 0 : index
    %192 = vector.load %arg3[%c256, %c0_62] : memref<352x96xbf16, #tpu.memory_space<vmem>>, vector<64x32xbf16>
    %193 = arith.truncf %188 : vector<8x32xf32> to vector<8x32xbf16>
    %cst_63 = arith.constant dense<0.000000e+00> : vector<8x96xf32>
    %194 = tpu.matmul %193, %189, %cst_63 {dimension_numbers = #tpu.dot_dimension_numbers<[1], [0], [0], [1], [0, 0, 1, 1], [], []>} : vector<8x32xbf16>, vector<32x96xbf16>, vector<8x96xf32> -> vector<8x96xf32>
    %c11 = arith.constant 11 : index
    %c0_64 = arith.constant 0 : index
    %195 = vector.load %arg4[%c11, %c0_64] : memref<19x96xf32, #tpu.memory_space<vmem>>, vector<1x96xf32>
    %196 = vector.broadcast %195 : vector<1x96xf32> to vector<8x96xf32>
    %197 = arith.addf %194, %196 : vector<8x96xf32>
    %198 = arith.truncf %197 : vector<8x96xf32> to vector<8x96xbf16>
    %199 = vector.extract_strided_slice %198 {offsets = [0, 0], sizes = [8, 8], strides = [1, 1]} : vector<8x96xbf16> to vector<8x8xbf16>
    %200 = vector.extract_strided_slice %198 {offsets = [0, 32], sizes = [8, 8], strides = [1, 1]} : vector<8x96xbf16> to vector<8x8xbf16>
    %201 = vector.extract_strided_slice %198 {offsets = [0, 64], sizes = [8, 8], strides = [1, 1]} : vector<8x96xbf16> to vector<8x8xbf16>
    %cst_65 = arith.constant dense<0.000000e+00> : vector<8x8xf32>
    %202 = tpu.matmul %199, %200, %cst_65 {dimension_numbers = #tpu.dot_dimension_numbers<[1], [1], [0], [0], [0, 0, 1, 0], [], []>} : vector<8x8xbf16>, vector<8x8xbf16>, vector<8x8xf32> -> vector<8x8xf32>
    %203 = vector.broadcast %1 : vector<1x8xf32> to vector<8x8xf32>
    %204 = arith.addf %202, %203 : vector<8x8xf32>
    %cst_66 = arith.constant dense<0xFF800000> : vector<8xf32>
    %205 = vector.multi_reduction <maximumf>, %204, %cst_66 [1] : vector<8x8xf32> to vector<8xf32>
    %206 = vector.shape_cast %205 : vector<8xf32> to vector<8x1xf32>
    %207 = vector.broadcast %206 : vector<8x1xf32> to vector<8x8xf32>
    %208 = arith.subf %204, %207 : vector<8x8xf32>
    %209 = math.exp %208 : vector<8x8xf32>
    %cst_67 = arith.constant dense<0.000000e+00> : vector<8xf32>
    %210 = vector.multi_reduction <add>, %209, %cst_67 [1] : vector<8x8xf32> to vector<8xf32>
    %211 = vector.shape_cast %210 : vector<8xf32> to vector<8x1xf32>
    %212 = tpu.reciprocal %211 {approx = true} : vector<8x1xf32> -> vector<8x1xf32>
    %213 = vector.broadcast %212 : vector<8x1xf32> to vector<8x8xf32>
    %214 = arith.mulf %209, %213 : vector<8x8xf32>
    %215 = arith.truncf %214 : vector<8x8xf32> to vector<8x8xbf16>
    %cst_68 = arith.constant dense<0.000000e+00> : vector<8x8xf32>
    %216 = tpu.matmul %215, %201, %cst_68 {dimension_numbers = #tpu.dot_dimension_numbers<[1], [0], [0], [1], [0, 0, 1, 1], [], []>} : vector<8x8xbf16>, vector<8x8xbf16>, vector<8x8xf32> -> vector<8x8xf32>
    %217 = vector.extract_strided_slice %198 {offsets = [0, 8], sizes = [8, 8], strides = [1, 1]} : vector<8x96xbf16> to vector<8x8xbf16>
    %218 = vector.extract_strided_slice %198 {offsets = [0, 40], sizes = [8, 8], strides = [1, 1]} : vector<8x96xbf16> to vector<8x8xbf16>
    %219 = vector.extract_strided_slice %198 {offsets = [0, 72], sizes = [8, 8], strides = [1, 1]} : vector<8x96xbf16> to vector<8x8xbf16>
    %cst_69 = arith.constant dense<0.000000e+00> : vector<8x8xf32>
    %220 = tpu.matmul %217, %218, %cst_69 {dimension_numbers = #tpu.dot_dimension_numbers<[1], [1], [0], [0], [0, 0, 1, 0], [], []>} : vector<8x8xbf16>, vector<8x8xbf16>, vector<8x8xf32> -> vector<8x8xf32>
    %221 = vector.broadcast %1 : vector<1x8xf32> to vector<8x8xf32>
    %222 = arith.addf %220, %221 : vector<8x8xf32>
    %cst_70 = arith.constant dense<0xFF800000> : vector<8xf32>
    %223 = vector.multi_reduction <maximumf>, %222, %cst_70 [1] : vector<8x8xf32> to vector<8xf32>
    %224 = vector.shape_cast %223 : vector<8xf32> to vector<8x1xf32>
    %225 = vector.broadcast %224 : vector<8x1xf32> to vector<8x8xf32>
    %226 = arith.subf %222, %225 : vector<8x8xf32>
    %227 = math.exp %226 : vector<8x8xf32>
    %cst_71 = arith.constant dense<0.000000e+00> : vector<8xf32>
    %228 = vector.multi_reduction <add>, %227, %cst_71 [1] : vector<8x8xf32> to vector<8xf32>
    %229 = vector.shape_cast %228 : vector<8xf32> to vector<8x1xf32>
    %230 = tpu.reciprocal %229 {approx = true} : vector<8x1xf32> -> vector<8x1xf32>
    %231 = vector.broadcast %230 : vector<8x1xf32> to vector<8x8xf32>
    %232 = arith.mulf %227, %231 : vector<8x8xf32>
    %233 = arith.truncf %232 : vector<8x8xf32> to vector<8x8xbf16>
    %cst_72 = arith.constant dense<0.000000e+00> : vector<8x8xf32>
    %234 = tpu.matmul %233, %219, %cst_72 {dimension_numbers = #tpu.dot_dimension_numbers<[1], [0], [0], [1], [0, 0, 1, 1], [], []>} : vector<8x8xbf16>, vector<8x8xbf16>, vector<8x8xf32> -> vector<8x8xf32>
    %235 = vector.extract_strided_slice %198 {offsets = [0, 16], sizes = [8, 8], strides = [1, 1]} : vector<8x96xbf16> to vector<8x8xbf16>
    %236 = vector.extract_strided_slice %198 {offsets = [0, 48], sizes = [8, 8], strides = [1, 1]} : vector<8x96xbf16> to vector<8x8xbf16>
    %237 = vector.extract_strided_slice %198 {offsets = [0, 80], sizes = [8, 8], strides = [1, 1]} : vector<8x96xbf16> to vector<8x8xbf16>
    %cst_73 = arith.constant dense<0.000000e+00> : vector<8x8xf32>
    %238 = tpu.matmul %235, %236, %cst_73 {dimension_numbers = #tpu.dot_dimension_numbers<[1], [1], [0], [0], [0, 0, 1, 0], [], []>} : vector<8x8xbf16>, vector<8x8xbf16>, vector<8x8xf32> -> vector<8x8xf32>
    %239 = vector.broadcast %1 : vector<1x8xf32> to vector<8x8xf32>
    %240 = arith.addf %238, %239 : vector<8x8xf32>
    %cst_74 = arith.constant dense<0xFF800000> : vector<8xf32>
    %241 = vector.multi_reduction <maximumf>, %240, %cst_74 [1] : vector<8x8xf32> to vector<8xf32>
    %242 = vector.shape_cast %241 : vector<8xf32> to vector<8x1xf32>
    %243 = vector.broadcast %242 : vector<8x1xf32> to vector<8x8xf32>
    %244 = arith.subf %240, %243 : vector<8x8xf32>
    %245 = math.exp %244 : vector<8x8xf32>
    %cst_75 = arith.constant dense<0.000000e+00> : vector<8xf32>
    %246 = vector.multi_reduction <add>, %245, %cst_75 [1] : vector<8x8xf32> to vector<8xf32>
    %247 = vector.shape_cast %246 : vector<8xf32> to vector<8x1xf32>
    %248 = tpu.reciprocal %247 {approx = true} : vector<8x1xf32> -> vector<8x1xf32>
    %249 = vector.broadcast %248 : vector<8x1xf32> to vector<8x8xf32>
    %250 = arith.mulf %245, %249 : vector<8x8xf32>
    %251 = arith.truncf %250 : vector<8x8xf32> to vector<8x8xbf16>
    %cst_76 = arith.constant dense<0.000000e+00> : vector<8x8xf32>
    %252 = tpu.matmul %251, %237, %cst_76 {dimension_numbers = #tpu.dot_dimension_numbers<[1], [0], [0], [1], [0, 0, 1, 1], [], []>} : vector<8x8xbf16>, vector<8x8xbf16>, vector<8x8xf32> -> vector<8x8xf32>
    %253 = vector.extract_strided_slice %198 {offsets = [0, 24], sizes = [8, 8], strides = [1, 1]} : vector<8x96xbf16> to vector<8x8xbf16>
    %254 = vector.extract_strided_slice %198 {offsets = [0, 56], sizes = [8, 8], strides = [1, 1]} : vector<8x96xbf16> to vector<8x8xbf16>
    %255 = vector.extract_strided_slice %198 {offsets = [0, 88], sizes = [8, 8], strides = [1, 1]} : vector<8x96xbf16> to vector<8x8xbf16>
    %cst_77 = arith.constant dense<0.000000e+00> : vector<8x8xf32>
    %256 = tpu.matmul %253, %254, %cst_77 {dimension_numbers = #tpu.dot_dimension_numbers<[1], [1], [0], [0], [0, 0, 1, 0], [], []>} : vector<8x8xbf16>, vector<8x8xbf16>, vector<8x8xf32> -> vector<8x8xf32>
    %257 = vector.broadcast %1 : vector<1x8xf32> to vector<8x8xf32>
    %258 = arith.addf %256, %257 : vector<8x8xf32>
    %cst_78 = arith.constant dense<0xFF800000> : vector<8xf32>
    %259 = vector.multi_reduction <maximumf>, %258, %cst_78 [1] : vector<8x8xf32> to vector<8xf32>
    %260 = vector.shape_cast %259 : vector<8xf32> to vector<8x1xf32>
    %261 = vector.broadcast %260 : vector<8x1xf32> to vector<8x8xf32>
    %262 = arith.subf %258, %261 : vector<8x8xf32>
    %263 = math.exp %262 : vector<8x8xf32>
    %cst_79 = arith.constant dense<0.000000e+00> : vector<8xf32>
    %264 = vector.multi_reduction <add>, %263, %cst_79 [1] : vector<8x8xf32> to vector<8xf32>
    %265 = vector.shape_cast %264 : vector<8xf32> to vector<8x1xf32>
    %266 = tpu.reciprocal %265 {approx = true} : vector<8x1xf32> -> vector<8x1xf32>
    %267 = vector.broadcast %266 : vector<8x1xf32> to vector<8x8xf32>
    %268 = arith.mulf %263, %267 : vector<8x8xf32>
    %269 = arith.truncf %268 : vector<8x8xf32> to vector<8x8xbf16>
    %cst_80 = arith.constant dense<0.000000e+00> : vector<8x8xf32>
    %270 = tpu.matmul %269, %255, %cst_80 {dimension_numbers = #tpu.dot_dimension_numbers<[1], [0], [0], [1], [0, 0, 1, 1], [], []>} : vector<8x8xbf16>, vector<8x8xbf16>, vector<8x8xf32> -> vector<8x8xf32>
    %271 = tpu.concatenate %216, %234, %252, %270 in 1 : vector<8x8xf32>, vector<8x8xf32>, vector<8x8xf32>, vector<8x8xf32> -> vector<8x32xf32>
    %272 = arith.truncf %271 : vector<8x32xf32> to vector<8x32xbf16>
    %cst_81 = arith.constant dense<0.000000e+00> : vector<8x32xf32>
    %273 = tpu.matmul %272, %190, %cst_81 {dimension_numbers = #tpu.dot_dimension_numbers<[1], [0], [0], [1], [0, 0, 1, 1], [], []>} : vector<8x32xbf16>, vector<32x32xbf16>, vector<8x32xf32> -> vector<8x32xf32>
    %c12 = arith.constant 12 : index
    %c0_82 = arith.constant 0 : index
    %274 = vector.load %arg4[%c12, %c0_82] : memref<19x96xf32, #tpu.memory_space<vmem>>, vector<1x32xf32>
    %275 = vector.broadcast %274 : vector<1x32xf32> to vector<8x32xf32>
    %276 = arith.addf %273, %275 : vector<8x32xf32>
    %277 = arith.addf %188, %276 : vector<8x32xf32>
    %c13 = arith.constant 13 : index
    %c0_83 = arith.constant 0 : index
    %278 = vector.load %arg4[%c13, %c0_83] : memref<19x96xf32, #tpu.memory_space<vmem>>, vector<1x32xf32>
    %c14 = arith.constant 14 : index
    %c0_84 = arith.constant 0 : index
    %279 = vector.load %arg4[%c14, %c0_84] : memref<19x96xf32, #tpu.memory_space<vmem>>, vector<1x32xf32>
    %cst_85 = arith.constant dense<0.000000e+00> : vector<8xf32>
    %280 = vector.multi_reduction <add>, %277, %cst_85 [1] : vector<8x32xf32> to vector<8xf32>
    %281 = vector.shape_cast %280 : vector<8xf32> to vector<8x1xf32>
    %cst_86 = arith.constant 3.200000e+01 : f32
    %282 = vector.broadcast %cst_86 : f32 to vector<8x1xf32>
    %283 = arith.divf %281, %282 : vector<8x1xf32>
    %284 = arith.mulf %277, %277 : vector<8x32xf32>
    %cst_87 = arith.constant dense<0.000000e+00> : vector<8xf32>
    %285 = vector.multi_reduction <add>, %284, %cst_87 [1] : vector<8x32xf32> to vector<8xf32>
    %286 = vector.shape_cast %285 : vector<8xf32> to vector<8x1xf32>
    %cst_88 = arith.constant 3.200000e+01 : f32
    %287 = vector.broadcast %cst_88 : f32 to vector<8x1xf32>
    %288 = arith.divf %286, %287 : vector<8x1xf32>
    %289 = arith.mulf %283, %283 : vector<8x1xf32>
    %290 = arith.subf %288, %289 : vector<8x1xf32>
    %291 = vector.broadcast %283 : vector<8x1xf32> to vector<8x32xf32>
    %292 = arith.subf %277, %291 : vector<8x32xf32>
    %cst_89 = arith.constant 9.99999996E-13 : f32
    %293 = vector.broadcast %cst_89 : f32 to vector<8x1xf32>
    %294 = arith.addf %290, %293 : vector<8x1xf32>
    %295 = math.rsqrt %294 : vector<8x1xf32>
    %296 = vector.broadcast %295 : vector<8x1xf32> to vector<8x32xf32>
    %297 = arith.mulf %292, %296 : vector<8x32xf32>
    %298 = vector.broadcast %278 : vector<1x32xf32> to vector<8x32xf32>
    %299 = arith.mulf %297, %298 : vector<8x32xf32>
    %300 = vector.broadcast %279 : vector<1x32xf32> to vector<8x32xf32>
    %301 = arith.addf %299, %300 : vector<8x32xf32>
    %302 = arith.truncf %301 : vector<8x32xf32> to vector<8x32xbf16>
    %cst_90 = arith.constant dense<0.000000e+00> : vector<8x64xf32>
    %303 = tpu.matmul %302, %191, %cst_90 {dimension_numbers = #tpu.dot_dimension_numbers<[1], [0], [0], [1], [0, 0, 1, 1], [], []>} : vector<8x32xbf16>, vector<32x64xbf16>, vector<8x64xf32> -> vector<8x64xf32>
    %c15 = arith.constant 15 : index
    %c0_91 = arith.constant 0 : index
    %304 = vector.load %arg4[%c15, %c0_91] : memref<19x96xf32, #tpu.memory_space<vmem>>, vector<1x64xf32>
    %305 = vector.broadcast %304 : vector<1x64xf32> to vector<8x64xf32>
    %306 = arith.addf %303, %305 : vector<8x64xf32>
    %307 = arith.mulf %306, %306 : vector<8x64xf32>
    %308 = arith.mulf %306, %307 : vector<8x64xf32>
    %cst_92 = arith.constant 4.471500e-02 : f32
    %309 = vector.broadcast %cst_92 : f32 to vector<8x64xf32>
    %310 = arith.mulf %309, %308 : vector<8x64xf32>
    %311 = arith.addf %306, %310 : vector<8x64xf32>
    %cst_93 = arith.constant 0.797884583 : f32
    %312 = vector.broadcast %cst_93 : f32 to vector<8x64xf32>
    %313 = arith.mulf %312, %311 : vector<8x64xf32>
    %314 = math.tanh %313 : vector<8x64xf32>
    %cst_94 = arith.constant 1.000000e+00 : f32
    %315 = vector.broadcast %cst_94 : f32 to vector<8x64xf32>
    %316 = arith.addf %315, %314 : vector<8x64xf32>
    %cst_95 = arith.constant 5.000000e-01 : f32
    %317 = vector.broadcast %cst_95 : f32 to vector<8x64xf32>
    %318 = arith.mulf %317, %316 : vector<8x64xf32>
    %319 = arith.mulf %306, %318 : vector<8x64xf32>
    %320 = arith.truncf %319 : vector<8x64xf32> to vector<8x64xbf16>
    %cst_96 = arith.constant dense<0.000000e+00> : vector<8x32xf32>
    %321 = tpu.matmul %320, %192, %cst_96 {dimension_numbers = #tpu.dot_dimension_numbers<[1], [0], [0], [1], [0, 0, 1, 1], [], []>} : vector<8x64xbf16>, vector<64x32xbf16>, vector<8x32xf32> -> vector<8x32xf32>
    %c16 = arith.constant 16 : index
    %c0_97 = arith.constant 0 : index
    %322 = vector.load %arg4[%c16, %c0_97] : memref<19x96xf32, #tpu.memory_space<vmem>>, vector<1x32xf32>
    %323 = vector.broadcast %322 : vector<1x32xf32> to vector<8x32xf32>
    %324 = arith.addf %321, %323 : vector<8x32xf32>
    %325 = arith.addf %301, %324 : vector<8x32xf32>
    %c17 = arith.constant 17 : index
    %c0_98 = arith.constant 0 : index
    %326 = vector.load %arg4[%c17, %c0_98] : memref<19x96xf32, #tpu.memory_space<vmem>>, vector<1x32xf32>
    %c18 = arith.constant 18 : index
    %c0_99 = arith.constant 0 : index
    %327 = vector.load %arg4[%c18, %c0_99] : memref<19x96xf32, #tpu.memory_space<vmem>>, vector<1x32xf32>
    %cst_100 = arith.constant dense<0.000000e+00> : vector<8xf32>
    %328 = vector.multi_reduction <add>, %325, %cst_100 [1] : vector<8x32xf32> to vector<8xf32>
    %329 = vector.shape_cast %328 : vector<8xf32> to vector<8x1xf32>
    %cst_101 = arith.constant 3.200000e+01 : f32
    %330 = vector.broadcast %cst_101 : f32 to vector<8x1xf32>
    %331 = arith.divf %329, %330 : vector<8x1xf32>
    %332 = arith.mulf %325, %325 : vector<8x32xf32>
    %cst_102 = arith.constant dense<0.000000e+00> : vector<8xf32>
    %333 = vector.multi_reduction <add>, %332, %cst_102 [1] : vector<8x32xf32> to vector<8xf32>
    %334 = vector.shape_cast %333 : vector<8xf32> to vector<8x1xf32>
    %cst_103 = arith.constant 3.200000e+01 : f32
    %335 = vector.broadcast %cst_103 : f32 to vector<8x1xf32>
    %336 = arith.divf %334, %335 : vector<8x1xf32>
    %337 = arith.mulf %331, %331 : vector<8x1xf32>
    %338 = arith.subf %336, %337 : vector<8x1xf32>
    %339 = vector.broadcast %331 : vector<8x1xf32> to vector<8x32xf32>
    %340 = arith.subf %325, %339 : vector<8x32xf32>
    %cst_104 = arith.constant 9.99999996E-13 : f32
    %341 = vector.broadcast %cst_104 : f32 to vector<8x1xf32>
    %342 = arith.addf %338, %341 : vector<8x1xf32>
    %343 = math.rsqrt %342 : vector<8x1xf32>
    %344 = vector.broadcast %343 : vector<8x1xf32> to vector<8x32xf32>
    %345 = arith.mulf %340, %344 : vector<8x32xf32>
    %346 = vector.broadcast %326 : vector<1x32xf32> to vector<8x32xf32>
    %347 = arith.mulf %345, %346 : vector<8x32xf32>
    %348 = vector.broadcast %327 : vector<1x32xf32> to vector<8x32xf32>
    %349 = arith.addf %347, %348 : vector<8x32xf32>
    %c320 = arith.constant 320 : index
    %c0_105 = arith.constant 0 : index
    %350 = vector.load %arg3[%c320, %c0_105] : memref<352x96xbf16, #tpu.memory_space<vmem>>, vector<32x32xbf16>
    %351 = vector.extract_strided_slice %349 {offsets = [0, 0], sizes = [1, 32], strides = [1, 1]} : vector<8x32xf32> to vector<1x32xf32>
    %352 = arith.truncf %351 : vector<1x32xf32> to vector<1x32xbf16>
    %cst_106 = arith.constant dense<0.000000e+00> : vector<1x32xf32>
    %353 = tpu.matmul %352, %350, %cst_106 {dimension_numbers = #tpu.dot_dimension_numbers<[1], [0], [0], [1], [0, 0, 1, 1], [], []>} : vector<1x32xbf16>, vector<32x32xbf16>, vector<1x32xf32> -> vector<1x32xf32>
    %c2 = arith.constant 2 : index
    %c0_107 = arith.constant 0 : index
    %354 = vector.load %arg4[%c2, %c0_107] : memref<19x96xf32, #tpu.memory_space<vmem>>, vector<1x32xf32>
    %355 = arith.addf %353, %354 : vector<1x32xf32>
    %356 = math.tanh %355 : vector<1x32xf32>
    %c0_108 = arith.constant 0 : index
    %c0_109 = arith.constant 0 : index
    %c0_110 = arith.constant 0 : index
    %357 = vector.load %arg5[%c0_108, %c0_109, %c0_110] : memref<1x1x32xf32, #tpu.memory_space<vmem>>, vector<1x1x32xf32>
    %358 = vector.shape_cast %357 : vector<1x1x32xf32> to vector<1x32xf32>
    %359 = vector.shape_cast %356 : vector<1x32xf32> to vector<1x1x32xf32>
    tpu.vector_store %arg5[%c0_108, %c0_109, %c0_110], %359 {strides = array<i32>} : memref<1x1x32xf32, #tpu.memory_space<vmem>>, vector<1x1x32xf32>,
    return
  }
  func.func @transform_0(%arg0: i32) -> (i32, i32, i32) {
    %c0_i32 = arith.constant 0 : i32
    %c0_i32_0 = arith.constant 0 : i32
    %c0_i32_1 = arith.constant 0 : i32
    return %arg0, %c0_i32, %c0_i32_0 : i32, i32, i32
  }
  func.func @transform_1(%arg0: i32) -> (i32, i32, i32) {
    %c0_i32 = arith.constant 0 : i32
    %c0_i32_0 = arith.constant 0 : i32
    %c0_i32_1 = arith.constant 0 : i32
    return %arg0, %c0_i32, %c0_i32_0 : i32, i32, i32
  }
  func.func @transform_2(%arg0: i32) -> (i32, i32) {
    %c0_i32 = arith.constant 0 : i32
    %c0_i32_0 = arith.constant 0 : i32
    %c0_i32_1 = arith.constant 0 : i32
    return %c0_i32, %c0_i32_0 : i32, i32
  }
  func.func @transform_3(%arg0: i32) -> (i32, i32) {
    %c0_i32 = arith.constant 0 : i32
    %c0_i32_0 = arith.constant 0 : i32
    %c0_i32_1 = arith.constant 0 : i32
    return %c0_i32, %c0_i32_0 : i32, i32
  }
  func.func @transform_4(%arg0: i32) -> (i32, i32, i32) {
    %c0_i32 = arith.constant 0 : i32
    %c0_i32_0 = arith.constant 0 : i32
    %c0_i32_1 = arith.constant 0 : i32
    return %arg0, %c0_i32, %c0_i32_0 : i32, i32, i32
  }
}

</mosaic_0001>

<bundles_post_ra>
// kernel: scibert_encoder_forward.1
= control target key start
LH: loop header
LB: loop body
LE: loop exit
PB: predicated region body
PF: predicated region fallthrough
CT: control target
= control target key end

     0   :  { %9 = vsyncpa [#allocation3], 0  ;;  %s2993_s0 = inlined_call_operand.vmem [shape: f32[2,8,32], index: 0, kind: input, shape index: {}]   ;;  %s2994_s1 = inlined_call_operand.vmem [shape: f32[2,1,8], index: 1, kind: input, shape index: {}]   ;;  %s2995_s2 = inlined_call_operand.vmem [shape: bf16[352,96], index: 2, kind: input, shape index: {}]   ;;  %s2996_s3 = inlined_call_operand.vmem [shape: f32[19,96], index: 3, kind: input, shape index: {}]   ;;  %s2997_s4 = inlined_call_operand.hbm [shape: f32[2,1,32], index: 4, kind: output, shape index: {}]  }
   0x1   :  { %11 = vsyncpa [#allocation3 + $0x1], 0  ;;  %s2526_s15 = smov 0   ;;  %s2528_s16 = smov 0  }
   0x2   :  { %s2530_s17 = smov 0   ;;  %s2532_s18 = smov 0  }
   0x3 LB: > { %s2547_s19 = sadd.s32 4294967295, %s2482_s18   ;;  %s1982_s20 = sadd.s32 4294967294, %s2482_s18   ;;  %s2482_s18 = sphi %s2532_s18, %s3011_s18   ;;  %s2478_s17 = sphi %s2530_s17, %s3010_s17   ;;  %s2474_s16 = sphi %s2528_s16, %s3009_s16   ;;  %s2470_s15 = sphi %s2526_s15, %s3008_s15  }
   0x4   : > { %s2551_s21 = sadd.s32 1, %s2482_s18   ;;  %s118_s22 = sadd.s32 1, %s2478_s17 }
   0x5   : > { %s115_s23 = ssub.s32 %s2482_s18, %s2551_s21  ;;  %p128_p0 = scmp.ne.s32.totalorder %s2478_s17, %s2474_s16 }
   0x6   : > { %p116_p1 = scmp.eq.s32.totalorder %s115_s23, 0  ;;  %p129_p2 = scmp.eq.s32.totalorder %s2547_s19, 1 }
   0x7   : > { %p134_p3 = scmp.ne.s32.totalorder %s2474_s16, %s2470_s15  ;;  %p135_p4 = scmp.eq.s32.totalorder %s1982_s20, 1 }
   0x8   : > { %s2562_s24 = scalar_select %p116_p1, %s2478_s17, %s118_s22  }
   0x9   : > { %p2564_p5 = por %p129_p2, %p128_p0  ;;  %p2568_p6 = por %p135_p4, %p134_p3 }
   0xa   : > { %p1985_p7 = scmp.ge.s32.totalorder %s2482_s18, 1  ;;  %p172_p8 = scmp.lt.s32.totalorder %s2482_s18, 3 }
   0xc   : > { %p173_p9 = pnand %p1985_p7, %p172_p8 }
   0xd   : > { %p199_p10 = scmp.lt.s32.totalorder (!%p173_p9), %s2547_s19, 1  ;;  %vm211_vm0 = vcmask (!%p173_p9), 261120   ;;  %v2350_v4 = vld [vmem:[%s2995_s2] sm:$0xff] (!%p173_p9)   ;;  %v2484_v5 = vmov (!%p173_p9), 0.0   ;;  %vm2485_vm1 = vmmov (!%p173_p9), 0   ;;  %v2351_v6 = vld [vmem:[%s2995_s2 + $0x8] sm:$0xff] (!%p173_p9)  }
   0xe   : > { %176 = sbr.rel (%p173_p9) target bundleno = 4987 (0x137b), region = 36  ;;  %2119 = vmatprep.subr.bf16.mxu0 (!%p173_p9), %v2484_v5  ;;  %2123 = vmatprep.mubr.msk.bf16.mxu0 (!%p173_p9), %vm2485_vm1, %v2484_v5  ;;  %v1987_v16 = vld [vmem:[%s2996_s3] ss:$0 sm:$0xff] (!%p173_p9)  ;;  %v1988_v18 = vld [vmem:[%s2996_s3 + $0x1] ss:$0 sm:$0xff] (!%p173_p9)  ;;  %s2486_s22 = smov (!%p173_p9), 120  }
   0xf   : > { %2120 = vmatpush3.bf16.msra.mxu0 (!%p173_p9), %v2350_v4  ;;  %2127 = vmatprep.subr.bf16.mxu1 (!%p173_p9), %v2484_v5  ;;  %v1989_v22 = vld [vmem:[%s2996_s3 + $0x3] ss:$0 sm:$0xff] (!%p173_p9)  ;;  %s2487_s23 = smov (!%p173_p9), 96   ;;  %s2489_s29 = smov (!%p173_p9), 80   ;;  %vm329_vm2 = vcmask (!%p173_p9), 64512   ;;  %vm393_vm3 = vcmask (!%p173_p9), 1043456  }
  0x10   : > { %2121 = vmatprep.subr.bf16.mxu0 (!%p173_p9), %v2484_v5  ;;  %2129 = vmatprep.mubr.msk.bf16.mxu1 (!%p173_p9), %vm2485_vm1, %v2484_v5  ;;  %s2490_s30 = smov (!%p173_p9), 112   ;;  %s2492_s6 = smov (!%p173_p9), 104   ;;  %vm780_vm4 = vcmask (!%p173_p9), 130048   ;;  %vm782_vm5 = vcmask (!%p173_p9), 195584   ;;  %vm973_vm6 = vcmask (!%p173_p9), 523264   ;;  %vm1903_vm7 = vcmask (!%p173_p9), 253952  }
  0x11   : > { %s2494_s10 = smov (!%p173_p9), 56   ;;  %s2495_s11 = smov (!%p173_p9), 48  }
  0x12   : > { %s3001_s12 = smov (!%p173_p9), 40   ;;  %s3000_s13 = smov (!%p173_p9), 8  }
  0x13   : > { %2122 = vmatpush3.bf16.msra.mxu0 (!%p173_p9), %v2351_v6  ;;  %s2998_s14 = smov (!%p173_p9), 24  }
  0x14   : > { %2133 = vmatprep.subr.bf16.mxu0 (!%p173_p9), %v2484_v5 }
  0x15   : > { %s2576_s27 = scalar_select %p199_p10, %s2547_s19, 1 }
  0x17   : > { %s1986_s28 = sshll.u32 %s2576_s27, 3  ;;  %s205_s9 = scalar_lea.vmem %s2994_s1, %s2576_s27 }
  0x18   : > { %s202_s5 = scalar_lea.vmem %s2993_s0, %s1986_s28  ;;  %s2488_s28 = smov 88   ;;  %v2655_v40 = vld [vmem:[%s205_s9] ss:$0 sm:$0xff] }
  0x19   : > { %v208_v0 = vld [vmem:[%s202_s5] sm:$0xff]  ;;  %s2491_s5 = smov 72   ;;  %s2493_s27 = smov 64  }
  0x1a   : > { %v212_v1 = vsel %vm211_vm0, %v208_v0, 0.0  ;;  %v217_v2 = vmul.f32 %v208_v0, %v208_v0  ;;  %s2999_s9 = smov 16  }
  0x1b   : > { %213 = vadd.xlane.f32.xlu0 %v212_v1 }
  0x1c   : > { %v218_v3 = vsel %vm211_vm0, %v217_v2, 0.0 }
  0x1f   : > { %219 = vadd.xlane.f32.xlu0 %v218_v3 }
  0xa8   : > { %v214_v7 = vpop.xlane.xlu0 %213 }
  0xa9   : > { %v216_v8 = vmul.f32 0.03125, %v214_v7 }
  0xab   : > { %v222_v10 = vmul.f32 %v216_v8, %v216_v8  ;;  %v224_v14 = vsub.f32 %v208_v0, %v216_v8 }
  0xac   : > { %v220_v9 = vpop.xlane.xlu0 %219 }
  0xad   : > { %v221_v11 = vmul.f32 0.03125, %v220_v9 }
  0xaf   : > { %v223_v12 = vsub.f32 %v221_v11, %v222_v10 }
  0xb1   : > { %v225_v13 = vadd.f32 1e-12, %v223_v12 }
  0xb3   : > { %2372 = vrsqrt.f32 %v225_v13 }
  0xbd   : > { %v2373_v15 = vpop.eup %2372 }
  0xbe   : > { %v227_v17 = vmul.f32 %v2373_v15, %v224_v14 }
  0xc0   : > { %v232_v19 = vmul.f32 %v1987_v16, %v227_v17 }
  0xc2   : > { %v2604_v20 = vadd.f32 %v1988_v18, %v232_v19 }
  0xc4   : > { %v258_v21 = vpack.c.bf16 %v2604_v20, %v2604_v20 }
  0xc6   : > { %2124 = vmatmul.mubr.msk.bf16.vlgmr.msra.gmra.mrb[0].mxu0 %vm211_vm0, %v258_v21 }
  0xc7   : > { %2135 = vmatprep.mubr.msk.bf16.mxu0 %vm2485_vm1, %v2484_v5 }
 0x199   : > { %v313_v23 = vpop.f32.mrb[0].mxu0 }
 0x19a   : > { %v314_v24 = vadd.f32 %v1989_v22, %v313_v23  ;;  %v2125_v25 = vpop.f32.mrb[1].mxu0 }
 0x19b   : > { %v316_v26 = vpop.f32.mrb[2].mxu0 }
 0x19c   : > { %v2614_v27 = vpack.c.bf16 %v314_v24, %v314_v24  ;;  %v2126_v28 = vpop.f32.mrb[3].mxu0 }
 0x19e   : > { %437 = vrot.lane.b32.xlu0 %v2614_v27, %s2486_s22  ;;  %327 = vrot.lane.b32.xlu1 %v2614_v27, %s2487_s23 }
 0x1a2   : > { %439 = vrot.lane.b32.xlu1 %v2614_v27, %s2488_s28 }
 0x1a6   : > { %549 = vrot.lane.b32.xlu1 %v2614_v27, %s2489_s29 }
 0x1aa   : > { %547 = vrot.lane.b32.xlu1 %v2614_v27, %s2490_s30 }
 0x1ae   : > { %659 = vrot.lane.b32.xlu1 %v2614_v27, %s2491_s5 }
 0x1b2   : > { %657 = vrot.lane.b32.xlu1 %v2614_v27, %s2492_s6 }
 0x210   : > { %v328_v29 = vpop.permute.xlu1 %327  ;;  %v438_v34 = vpop.permute.xlu0 %437 }
 0x211   : > { %v334_v30 = vsel %vm329_vm2, %v328_v29, 0 }
 0x212   : > { %2128 = vmatpush3.bf16.xpose.msra.mxu1 %v334_v30 }
 0x213   : > { %2139 = vmatprep.subr.bf16.mxu1 %v2484_v5 }
 0x214   : > { %v440_v31 = vpop.permute.xlu1 %439 }
 0x215   : > { %v445_v32 = vsel %vm329_vm2, %v440_v31, 0 }
 0x218   : > { %v550_v33 = vpop.permute.xlu1 %549 }
 0x219   : > { %2130 = vmatmul.mubr.msk.bf16.vlgmr.msra.gmra.mrb[0].mxu1 %vm329_vm2, %v2614_v27  ;;  %v555_v36 = vsel %vm329_vm2, %v550_v33, 0 }
 0x21a   : > { %2140 = vmatpush3.bf16.xpose.msra.mxu1 %v445_v32  ;;  %2141 = vmatprep.mubr.msk.bf16.mxu1 %vm2485_vm1, %v2484_v5 }
 0x21b   : > { %2151 = vmatprep.subr.bf16.mxu1 %v2484_v5 }
 0x21c   : > { %v548_v35 = vpop.permute.xlu1 %547 }
 0x220   : > { %v660_v37 = vpop.permute.xlu1 %659 }
 0x221   : > { %2142 = vmatmul.mubr.msk.bf16.vlgmr.msra.gmra.mrb[4].mxu1 %vm329_vm2, %v438_v34  ;;  %v665_v38 = vsel %vm329_vm2, %v660_v37, 0 }
 0x222   : > { %2152 = vmatpush3.bf16.xpose.msra.mxu1 %v555_v36  ;;  %2153 = vmatprep.mubr.msk.bf16.mxu1 %vm2485_vm1, %v2484_v5 }
 0x223   : > { %2163 = vmatprep.subr.bf16.mxu1 %v2484_v5 }
 0x224   : > { %v658_v39 = vpop.permute.xlu1 %657 }
 0x229   : > { %2154 = vmatmul.mubr.msk.bf16.vlgmr.msra.gmra.mrb[8].mxu1 %vm329_vm2, %v548_v35 }
 0x22a   : > { %2164 = vmatpush3.bf16.xpose.msra.mxu1 %v665_v38  ;;  %2165 = vmatprep.mubr.msk.bf16.mxu1 %vm2485_vm1, %v2484_v5 }
 0x22b   : > { %2175 = vmatprep.subr.bf16.mxu1 %v2484_v5 }
 0x231   : > { %2166 = vmatmul.mubr.msk.bf16.vlgmr.msra.gmra.mrb[12].mxu1 %vm329_vm2, %v658_v39 }
 0x232   : > { %2179 = vmatprep.mubr.msk.bf16.mxu1 %vm2485_vm1, %v2484_v5 }
 0x2ec   : > { %v370_v41 = vpop.f32.mrb[0].mxu1 }
 0x2ed   : > { %v371_v42 = vadd.f32 %v2655_v40, %v370_v41  ;;  %v2131_v43 = vpop.f32.mrb[1].mxu1 }
 0x2ee   : > { %v373_v44 = vpop.f32.mrb[2].mxu1 }
 0x2ef   : > { %v2132_v45 = vpop.f32.mrb[3].mxu1  ;;  %v376_v46 = vsel %vm329_vm2, %v371_v42, -inf }
 0x2f0   : > { %377 = vmax.xlane.f32.xlu1 %v376_v46 }
 0x2f4   : > { %v481_v47 = vpop.f32.mrb[4].mxu1 }
 0x2f5   : > { %v482_v48 = vadd.f32 %v2655_v40, %v481_v47  ;;  %v2143_v49 = vpop.f32.mrb[5].mxu1 }
 0x2f6   : > { %v484_v50 = vpop.f32.mrb[6].mxu1 }
 0x2f7   : > { %v2144_v51 = vpop.f32.mrb[7].mxu1  ;;  %v487_v52 = vsel %vm329_vm2, %v482_v48, -inf }
 0x2f8   : > { %488 = vmax.xlane.f32.xlu0 %v487_v52 }
 0x2fc   : > { %v591_v53 = vpop.f32.mrb[8].mxu1 }
 0x2fd   : > { %v592_v54 = vadd.f32 %v2655_v40, %v591_v53  ;;  %v2155_v55 = vpop.f32.mrb[9].mxu1 }
 0x2fe   : > { %v594_v56 = vpop.f32.mrb[10].mxu1 }
 0x2ff   : > { %v2156_v57 = vpop.f32.mrb[11].mxu1  ;;  %v597_v58 = vsel %vm329_vm2, %v592_v54, -inf  ;;  %v2352_v56 = vld [vmem:[%s2995_s2 + $0x10] sm:$0xff]  }
 0x300   : > { %598 = vmax.xlane.f32.xlu1 %v597_v58  ;;  %2176 = vmatpush3.bf16.msra.mxu1 %v2352_v56  ;;  %v2353_v57 = vld [vmem:[%s2995_s2 + $0x18] sm:$0xff]  }
 0x301   : > { %2177 = vmatprep.subr.bf16.mxu1 %v2484_v5 }
 0x304   : > { %v701_v59 = vpop.f32.mrb[12].mxu1  ;;  %2178 = vmatpush3.bf16.msra.mxu1 %v2353_v57 }
 0x305   : > { %v702_v60 = vadd.f32 %v2655_v40, %v701_v59  ;;  %v2167_v61 = vpop.f32.mrb[13].mxu1  ;;  %2191 = vmatprep.subr.bf16.mxu1 %v2484_v5 }
 0x306   : > { %v704_v62 = vpop.f32.mrb[14].mxu1 }
 0x307   : > { %v2168_v63 = vpop.f32.mrb[15].mxu1  ;;  %v707_v0 = vsel %vm329_vm2, %v702_v60, -inf }
 0x308   : > { %708 = vmax.xlane.f32.xlu0 %v707_v0 }
 0x37d   : > { %v378_v1 = vpop.xlane.xlu1 %377 }
 0x37e   : > { %v379_v2 = vsub.f32 %v371_v42, %v378_v1 }
 0x380   : > { %v380_v3 = vmul.f32 1.442695, %v379_v2 }
 0x382   : > { %2374 = vpow2.f32 %v380_v3 }
 0x385   : > { %v489_v4 = vpop.xlane.xlu0 %488 }
 0x386   : > { %v490_v6 = vsub.f32 %v482_v48, %v489_v4 }
 0x388   : > { %v491_v7 = vmul.f32 1.442695, %v490_v6 }
 0x38a   : > { %2376 = vpow2.f32 %v491_v7 }
 0x38c   : > { %v2375_v8 = vpop.eup %2374 }
 0x38d   : > { %v382_v9 = vsel %vm329_vm2, %v2375_v8, 0.0  ;;  %v599_v17 = vpop.xlane.xlu1 %598 }
 0x38e   : > { %383 = vadd.xlane.f32.xlu1 %v382_v9  ;;  %v600_v18 = vsub.f32 %v592_v54, %v599_v17 }
 0x390   : > { %v601_v19 = vmul.f32 1.442695, %v600_v18 }
 0x394   : > { %v2377_v10 = vpop.eup %2376 }
 0x395   : > { %v709_v11 = vpop.xlane.xlu0 %708  ;;  %v493_v12 = vsel %vm329_vm2, %v2377_v10, 0.0 }
 0x396   : > { %v710_v13 = vsub.f32 %v702_v60, %v709_v11  ;;  %494 = vadd.xlane.f32.xlu0 %v493_v12 }
 0x398   : > { %v711_v14 = vmul.f32 1.442695, %v710_v13 }
 0x39a   : > { %2378 = vpow2.f32 %v711_v14 }
 0x39b   : > { %2380 = vpow2.f32 %v601_v19 }
 0x39f   : > { %388 = vrot.lane.b32.xlu1 %v2614_v27, %s2493_s27 }
 0x3a4   : > { %v2379_v15 = vpop.eup %2378 }
 0x3a5   : > { %v713_v16 = vsel %vm329_vm2, %v2379_v15, 0.0  ;;  %v2381_v21 = vpop.eup %2380 }
 0x3a6   : > { %714 = vadd.xlane.f32.xlu0 %v713_v16  ;;  %v603_v22 = vsel %vm329_vm2, %v2381_v21, 0.0 }
 0x3bc   : > { %499 = vrot.lane.b32.xlu0 %v2614_v27, %s2494_s10 }
 0x3c3   : > { %604 = vadd.xlane.f32.xlu1 %v603_v22  ;;  %v2355_v22 = vld [vmem:[%s2995_s2 + $0x28] sm:$0xff]  }
 0x3d4   : > { %609 = vrot.lane.b32.xlu1 %v2614_v27, %s2495_s11 }
 0x3d8   : > { %719 = vrot.lane.b32.xlu1 %v2614_v27, %s3001_s12 }
 0x41b   : > { %v384_v23 = vpop.xlane.xlu1 %383 }
 0x41c   : > { %2382 = vrcp.f32 %v384_v23 }
 0x41f   : > { %v389_v24 = vpop.permute.xlu1 %388 }
 0x420   : > { %v395_v25 = vsel %vm393_vm3, %v389_v24, 0 }
 0x421   : > { %2134 = vmatpush3.bf16.msra.mxu0 %v395_v25 }
 0x422   : > { %2145 = vmatprep.subr.bf16.mxu0 %v2484_v5 }
 0x423   : > { %v495_v28 = vpop.xlane.xlu0 %494 }
 0x424   : > { %2384 = vrcp.f32 %v495_v28 }
 0x426   : > { %v2383_v26 = vpop.eup %2382 }
 0x427   : > { %v386_v29 = vmul.f32 %v2383_v26, %v2375_v8 }
 0x429   : > { %v387_v30 = vpack.c.bf16 %v386_v29, %v386_v29 }
 0x42b   : > { %2136 = vmatmul.mubr.msk.bf16.vlgmr.msra.gmra.mrb[4].mxu0 %vm329_vm2, %v387_v30 }
 0x42c   : > { %2147 = vmatprep.mubr.msk.bf16.mxu0 %vm2485_vm1, %v2484_v5 }
 0x42e   : > { %v2385_v27 = vpop.eup %2384 }
 0x42f   : > { %v497_v32 = vmul.f32 %v2385_v27, %v2377_v10  ;;  %v2002_v10 = vld [vmem:[%s2996_s3 + $0x4] ss:$0 sm:$0xff] }
 0x431   : > { %v498_v35 = vpack.c.bf16 %v497_v32, %v497_v32 }
 0x433   : > { %v715_v31 = vpop.xlane.xlu0 %714 }
 0x437   : > { %v500_v33 = vpop.permute.xlu0 %499 }
 0x438   : > { %v505_v34 = vsel %vm393_vm3, %v500_v33, 0  ;;  %v2007_v33 = vld [vmem:[%s2996_s3 + $0x6] ss:$0 sm:$0xff] }
 0x439   : > { %2146 = vmatpush3.bf16.msra.mxu0 %v505_v34 }
 0x43a   : > { %2157 = vmatprep.subr.bf16.mxu0 %v2484_v5 }
 0x43c   : > { %2148 = vmatmul.mubr.msk.bf16.vlgmr.msra.gmra.mrb[8].mxu0 %vm329_vm2, %v498_v35 }
 0x43d   : > { %2159 = vmatprep.mubr.msk.bf16.mxu0 %vm2485_vm1, %v2484_v5 }
 0x450   : > { %v605_v36 = vpop.xlane.xlu1 %604 }
 0x451   : > { %2386 = vrcp.f32 %v605_v36 }
 0x452   : > { %2388 = vrcp.f32 %v715_v31  ;;  %v2006_v31 = vld [vmem:[%s2996_s3 + $0x5] ss:$0 sm:$0xff] }
 0x454   : > { %v610_v37 = vpop.permute.xlu1 %609 }
 0x455   : > { %v615_v38 = vsel %vm393_vm3, %v610_v37, 0  ;;  %v2356_v37 = vld [vmem:[%s2995_s2 + $0x30] sm:$0xff]  }
 0x456   : > { %2158 = vmatpush3.bf16.msra.mxu0 %v615_v38  ;;  %v2357_v38 = vld [vmem:[%s2995_s2 + $0x38] sm:$0xff]  }
 0x457   : > { %2169 = vmatprep.subr.bf16.mxu0 %v2484_v5 }
 0x458   : > { %v720_v42 = vpop.permute.xlu1 %719 }
 0x459   : > { %v725_v45 = vsel %vm393_vm3, %v720_v42, 0  ;;  %v2008_v42 = vld [vmem:[%s2996_s3 + $0x7] ss:$0 sm:$0xff] }
 0x45b   : > { %v2387_v39 = vpop.eup %2386 }
 0x45c   : > { %v607_v41 = vmul.f32 %v2387_v39, %v2381_v21  ;;  %v2389_v44 = vpop.eup %2388  ;;  %v2354_v21 = vld [vmem:[%s2995_s2 + $0x20] sm:$0xff]  }
 0x45d   : > { %v717_v46 = vmul.f32 %v2389_v44, %v2379_v15  ;;  %v2358_v39 = vld [vmem:[%s2995_s2 + $0x40] sm:$0xff]  }
 0x45e   : > { %v608_v43 = vpack.c.bf16 %v607_v41, %v607_v41  ;;  %v2359_v41 = vld [vmem:[%s2995_s2 + $0x48] sm:$0xff]  }
 0x45f   : > { %v718_v47 = vpack.c.bf16 %v717_v46, %v717_v46 }
 0x460   : > { %2160 = vmatmul.mubr.msk.bf16.vlgmr.msra.gmra.mrb[12].mxu0 %vm329_vm2, %v608_v43 }
 0x461   : > { %2170 = vmatpush3.bf16.msra.mxu0 %v725_v45  ;;  %2171 = vmatprep.mubr.msk.bf16.mxu0 %vm2485_vm1, %v2484_v5 }
 0x462   : > { %2183 = vmatprep.subr.bf16.mxu0 %v2484_v5 }
 0x468   : > { %2172 = vmatmul.mubr.msk.bf16.vlgmr.msra.gmra.mrb[16].mxu0 %vm329_vm2, %v718_v47 }
 0x469   : > { %2187 = vmatprep.mubr.msk.bf16.mxu0 %vm2485_vm1, %v2484_v5  ;;  %2184 = vmatpush3.bf16.msra.mxu0 %v2354_v21 }
 0x46a   : > { %2185 = vmatprep.subr.bf16.mxu0 %v2484_v5 }
 0x46d   : > { %2186 = vmatpush3.bf16.msra.mxu0 %v2355_v22 }
 0x46e   : > { %2203 = vmatprep.subr.bf16.mxu0 %v2484_v5 }
 0x4fe   : > { %v431_v48 = vpop.f32.mrb[4].mxu0 }
 0x4ff   : > { %v2137_v49 = vpop.f32.mrb[5].mxu0 }
 0x500   : > { %v434_v50 = vpop.f32.mrb[6].mxu0 }
 0x501   : > { %v2138_v51 = vpop.f32.mrb[7].mxu0 }
 0x50f   : > { %v541_v52 = vpop.f32.mrb[8].mxu0 }
 0x510   : > { %768 = vrot.lane.b32.xlu0 %v541_v52, %s3000_s13  ;;  %v2149_v53 = vpop.f32.mrb[9].mxu0 }
 0x511   : > { %v544_v54 = vpop.f32.mrb[10].mxu0 }
 0x512   : > { %v2150_v55 = vpop.f32.mrb[11].mxu0 }
 0x533   : > { %v651_v58 = vpop.f32.mrb[12].mxu0 }
 0x534   : > { %772 = vrot.lane.b32.xlu1 %v651_v58, %s2999_s9  ;;  %v2161_v59 = vpop.f32.mrb[13].mxu0  ;;  %v2012_v58 = vld [vmem:[%s2996_s3 + $0x8] ss:$0 sm:$0xff] }
 0x535   : > { %v654_v60 = vpop.f32.mrb[14].mxu0 }
 0x536   : > { %v2162_v61 = vpop.f32.mrb[15].mxu0 }
 0x53b   : > { %v761_v62 = vpop.f32.mrb[16].mxu0 }
 0x53c   : > { %776 = vrot.lane.b32.xlu0 %v761_v62, %s2998_s14  ;;  %v2173_v63 = vpop.f32.mrb[17].mxu0 }
 0x53d   : > { %v764_v0 = vpop.f32.mrb[18].mxu0 }
 0x53e   : > { %v2174_v1 = vpop.f32.mrb[19].mxu0 }
 0x582   : > { %v769_v2 = vpop.permute.xlu0 %768 }
 0x583   : > { %v779_v4 = vsel %vm329_vm2, %v431_v48, %v769_v2 }
 0x5a6   : > { %v773_v3 = vpop.permute.xlu1 %772 }
 0x5a7   : > { %v781_v6 = vsel %vm780_vm4, %v779_v4, %v773_v3  ;;  %v2360_v4 = vld [vmem:[%s2995_s2 + $0x50] sm:$0xff]  }
 0x5ae   : > { %v777_v7 = vpop.permute.xlu0 %776 }
 0x5af   : > { %v783_v8 = vsel %vm782_vm5, %v781_v6, %v777_v7  ;;  %v2361_v6 = vld [vmem:[%s2995_s2 + $0x58] sm:$0xff]  }
 0x5b0   : > { %v784_v9 = vpack.c.bf16 %v783_v8, %v783_v8 }
 0x5b2   : > { %2180 = vmatmul.mubr.msk.bf16.vlgmr.msra.gmra.mrb[16].mxu1 %vm211_vm0, %v784_v9 }
 0x5b3   : > { %2199 = vmatprep.mubr.msk.bf16.mxu1 %vm2485_vm1, %v2484_v5  ;;  %2192 = vmatpush3.bf16.msra.mxu1 %v2356_v37 }
 0x5b4   : > { %2193 = vmatprep.subr.bf16.mxu1 %v2484_v5 }
 0x5b7   : > { %2194 = vmatpush3.bf16.msra.mxu1 %v2357_v38 }
 0x5b8   : > { %2195 = vmatprep.subr.bf16.mxu1 %v2484_v5 }
 0x5bb   : > { %2196 = vmatpush3.bf16.msra.mxu1 %v2358_v39 }
 0x5bc   : > { %2197 = vmatprep.subr.bf16.mxu1 %v2484_v5 }
 0x5bf   : > { %2198 = vmatpush3.bf16.msra.mxu1 %v2359_v41 }
 0x5c0   : > { %2217 = vmatprep.subr.bf16.mxu1 %v2484_v5 }
 0x685   : > { %v839_v11 = vpop.f32.mrb[16].mxu1 }
 0x686   : > { %v840_v12 = vadd.f32 %v2002_v10, %v839_v11  ;;  %v2181_v13 = vpop.f32.mrb[17].mxu1 }
 0x687   : > { %v842_v14 = vpop.f32.mrb[18].mxu1 }
 0x688   : > { %v845_v15 = vadd.f32 %v840_v12, %v2604_v20  ;;  %v2182_v16 = vpop.f32.mrb[19].mxu1 }
 0x689   : > { %v2018_v16 = vld [vmem:[%s2996_s3 + $0x9] ss:$0 sm:$0xff] }
 0x68a   : > { %v848_v17 = vsel %vm211_vm0, %v845_v15, 0.0  ;;  %v852_v18 = vmul.f32 %v845_v15, %v845_v15 }
 0x68b   : > { %849 = vadd.xlane.f32.xlu1 %v848_v17 }
 0x68c   : > { %v853_v19 = vsel %vm211_vm0, %v852_v18, 0.0  ;;  %v2019_v18 = vld [vmem:[%s2996_s3 + $0xa] ss:$0 sm:$0xff] }
 0x68d   : > { %854 = vadd.xlane.f32.xlu0 %v853_v19 }
 0x718   : > { %v850_v20 = vpop.xlane.xlu1 %849 }
 0x719   : > { %v851_v23 = vmul.f32 0.03125, %v850_v20  ;;  %v2020_v20 = vld [vmem:[%s2996_s3 + $0xb] ss:$0 sm:$0xff] }
 0x71a   : > { %v855_v24 = vpop.xlane.xlu0 %854 }
 0x71b   : > { %v857_v25 = vmul.f32 %v851_v23, %v851_v23  ;;  %v856_v26 = vmul.f32 0.03125, %v855_v24  ;;  %v859_v30 = vsub.f32 %v845_v15, %v851_v23 }
 0x71d   : > { %v858_v28 = vsub.f32 %v856_v26, %v857_v25 }
 0x71f   : > { %v860_v29 = vadd.f32 1e-12, %v858_v28 }
 0x721   : > { %2390 = vrsqrt.f32 %v860_v29 }
 0x72b   : > { %v2391_v27 = vpop.eup %2390 }
 0x72c   : > { %v862_v32 = vmul.f32 %v2391_v27, %v859_v30 }
 0x72e   : > { %v867_v34 = vmul.f32 %v2006_v31, %v862_v32 }
 0x730   : > { %v872_v35 = vadd.f32 %v2007_v33, %v867_v34 }
 0x732   : > { %v873_v36 = vpack.c.bf16 %v872_v35, %v872_v35 }
 0x734   : > { %2188 = vmatmul.mubr.msk.bf16.vlgmr.msra.gmra.mrb[20].mxu0 %vm211_vm0, %v873_v36 }
 0x735   : > { %2207 = vmatprep.mubr.msk.bf16.mxu0 %vm2485_vm1, %v2484_v5  ;;  %2204 = vmatpush3.bf16.msra.mxu0 %v2360_v4 }
 0x736   : > { %2205 = vmatprep.subr.bf16.mxu0 %v2484_v5 }
 0x739   : > { %2206 = vmatpush3.bf16.msra.mxu0 %v2361_v6 }
 0x73a   : > { %2211 = vmatprep.subr.bf16.mxu0 %v2484_v5 }
 0x807   : > { %v928_v43 = vpop.f32.mrb[20].mxu0 }
 0x808   : > { %v929_v44 = vadd.f32 %v2008_v42, %v928_v43  ;;  %v2189_v45 = vpop.f32.mrb[21].mxu0 }
 0x809   : > { %v931_v46 = vpop.f32.mrb[22].mxu0 }
 0x80a   : > { %v934_v47 = vmul.f32 %v929_v44, %v929_v44  ;;  %v2190_v48 = vpop.f32.mrb[23].mxu0 }
 0x80c   : > { %v935_v49 = vmul.f32 %v934_v47, %v929_v44 }
 0x80e   : > { %v936_v50 = vmul.f32 0.044715, %v935_v49 }
 0x810   : > { %v937_v51 = vadd.f32 %v936_v50, %v929_v44 }
 0x812   : > { %v938_v52 = vmul.f32 0.7978846, %v937_v51 }
 0x814   : > { %2392 = vtanh.f32 %v938_v52 }
 0x81e   : > { %v2393_v53 = vpop.eup %2392 }
 0x81f   : > { %v940_v54 = vadd.f32 1.0, %v2393_v53 }
 0x821   : > { %v941_v55 = vmul.f32 0.5, %v940_v54 }
 0x823   : > { %v942_v56 = vmul.f32 %v941_v55, %v929_v44 }
 0x825   : > { %v943_v57 = vpack.c.bf16 %v942_v56, %v942_v56 }
 0x827   : > { %2200 = vmatmul.mubr.msk.bf16.vlgmr.msra.gmra.mrb[20].mxu1 %vm973_vm6, %v943_v57 }
 0x828   : > { %2219 = vmatprep.mubr.msk.bf16.mxu1 %vm2485_vm1, %v2484_v5 }
 0x8fa   : > { %v1011_v59 = vpop.f32.mrb[20].mxu1 }
 0x8fb   : > { %v1012_v60 = vadd.f32 %v2012_v58, %v1011_v59  ;;  %v2201_v61 = vpop.f32.mrb[21].mxu1 }
 0x8fc   : > { %v1014_v62 = vpop.f32.mrb[22].mxu1 }
 0x8fd   : > { %v1017_v63 = vadd.f32 %v1012_v60, %v872_v35  ;;  %v2202_v0 = vpop.f32.mrb[23].mxu1 }
 0x8ff   : > { %v1020_v1 = vsel %vm211_vm0, %v1017_v63, 0.0  ;;  %v1024_v2 = vmul.f32 %v1017_v63, %v1017_v63 }
 0x900   : > { %1021 = vadd.xlane.f32.xlu0 %v1020_v1 }
 0x901   : > { %v1025_v3 = vsel %vm211_vm0, %v1024_v2, 0.0 }
 0x902   : > { %1026 = vadd.xlane.f32.xlu1 %v1025_v3 }
 0x98d   : > { %v1022_v7 = vpop.xlane.xlu0 %1021 }
 0x98e   : > { %v1023_v8 = vmul.f32 0.03125, %v1022_v7 }
 0x98f   : > { %v1027_v9 = vpop.xlane.xlu1 %1026 }
 0x990   : > { %v1029_v10 = vmul.f32 %v1023_v8, %v1023_v8  ;;  %v1028_v11 = vmul.f32 0.03125, %v1027_v9  ;;  %v1031_v14 = vsub.f32 %v1017_v63, %v1023_v8 }
 0x992   : > { %v1030_v12 = vsub.f32 %v1028_v11, %v1029_v10 }
 0x994   : > { %v1032_v13 = vadd.f32 1e-12, %v1030_v12 }
 0x996   : > { %2394 = vrsqrt.f32 %v1032_v13 }
 0x9a0   : > { %v2395_v15 = vpop.eup %2394 }
 0x9a1   : > { %v1034_v17 = vmul.f32 %v2395_v15, %v1031_v14 }
 0x9a3   : > { %v1039_v19 = vmul.f32 %v2018_v16, %v1034_v17 }
 0x9a5   : > { %v2778_v21 = vadd.f32 %v2019_v18, %v1039_v19 }
 0x9a7   : > { %v1065_v22 = vpack.c.bf16 %v2778_v21, %v2778_v21 }
 0x9a9   : > { %2208 = vmatmul.mubr.msk.bf16.vlgmr.msra.gmra.mrb[24].mxu0 %vm211_vm0, %v1065_v22 }
 0x9aa   : > { %2213 = vmatprep.mubr.msk.bf16.mxu0 %vm2485_vm1, %v2484_v5 }
 0xa7c   : > { %v1120_v23 = vpop.f32.mrb[24].mxu0 }
 0xa7d   : > { %v1121_v24 = vadd.f32 %v2020_v20, %v1120_v23  ;;  %v2209_v25 = vpop.f32.mrb[25].mxu0 }
 0xa7e   : > { %v1123_v26 = vpop.f32.mrb[26].mxu0 }
 0xa7f   : > { %v2788_v28 = vpack.c.bf16 %v1121_v24, %v1121_v24  ;;  %v2210_v29 = vpop.f32.mrb[27].mxu0 }
 0xa81   : > { %1238 = vrot.lane.b32.xlu1 %v2788_v28, %s2488_s28  ;;  %1128 = vrot.lane.b32.xlu0 %v2788_v28, %s2487_s23  ;;  %s3005_s23 = smov 8  }
 0xa85   : > { %1236 = vrot.lane.b32.xlu1 %v2788_v28, %s2486_s22  ;;  %1348 = vrot.lane.b32.xlu0 %v2788_v28, %s2489_s29  ;;  %s3004_s22 = smov 40  }
 0xa89   : > { %1346 = vrot.lane.b32.xlu1 %v2788_v28, %s2490_s30  ;;  %1458 = vrot.lane.b32.xlu0 %v2788_v28, %s2491_s5 }
 0xa8d   : > { %1456 = vrot.lane.b32.xlu1 %v2788_v28, %s2492_s6  ;;  %s3006_s6 = smov 16  }
 0xaf3   : > { %v1129_v30 = vpop.permute.xlu0 %1128  ;;  %v1239_v31 = vpop.permute.xlu1 %1238 }
 0xaf4   : > { %v1134_v27 = vsel %vm329_vm2, %v1129_v30, 0  ;;  %v1244_v32 = vsel %vm329_vm2, %v1239_v31, 0 }
 0xaf5   : > { %2212 = vmatpush3.bf16.xpose.msra.mxu0 %v1134_v27 }
 0xaf6   : > { %2223 = vmatprep.subr.bf16.mxu0 %v2484_v5 }
 0xaf7   : > { %v1349_v33 = vpop.permute.xlu0 %1348  ;;  %v1237_v34 = vpop.permute.xlu1 %1236 }
 0xaf8   : > { %v1354_v35 = vsel %vm329_vm2, %v1349_v33, 0 }
 0xafb   : > { %v1459_v36 = vpop.permute.xlu0 %1458  ;;  %v1347_v37 = vpop.permute.xlu1 %1346 }
 0xafc   : > { %2214 = vmatmul.mubr.msk.bf16.vlgmr.msra.gmra.mrb[28].mxu0 %vm329_vm2, %v2788_v28  ;;  %v1464_v38 = vsel %vm329_vm2, %v1459_v36, 0 }
 0xafd   : > { %2224 = vmatpush3.bf16.xpose.msra.mxu0 %v1244_v32  ;;  %2225 = vmatprep.mubr.msk.bf16.mxu0 %vm2485_vm1, %v2484_v5 }
 0xafe   : > { %2235 = vmatprep.subr.bf16.mxu0 %v2484_v5 }
 0xaff   : > { %v1457_v39 = vpop.permute.xlu1 %1456 }
 0xb04   : > { %2226 = vmatmul.mubr.msk.bf16.vlgmr.msra.gmra.mrb[32].mxu0 %vm329_vm2, %v1237_v34 }
 0xb05   : > { %2236 = vmatpush3.bf16.xpose.msra.mxu0 %v1354_v35  ;;  %2237 = vmatprep.mubr.msk.bf16.mxu0 %vm2485_vm1, %v2484_v5 }
 0xb06   : > { %2247 = vmatprep.subr.bf16.mxu0 %v2484_v5 }
 0xb0c   : > { %2238 = vmatmul.mubr.msk.bf16.vlgmr.msra.gmra.mrb[36].mxu0 %vm329_vm2, %v1347_v37 }
 0xb0d   : > { %2248 = vmatpush3.bf16.xpose.msra.mxu0 %v1464_v38  ;;  %2249 = vmatprep.mubr.msk.bf16.mxu0 %vm2485_vm1, %v2484_v5 }
 0xb0e   : > { %2259 = vmatprep.subr.bf16.mxu0 %v2484_v5 }
 0xb14   : > { %2250 = vmatmul.mubr.msk.bf16.vlgmr.msra.gmra.mrb[40].mxu0 %vm329_vm2, %v1457_v39 }
 0xb15   : > { %2263 = vmatprep.mubr.msk.bf16.mxu0 %vm2485_vm1, %v2484_v5 }
 0xbcf   : > { %v1170_v41 = vpop.f32.mrb[28].mxu0 }
 0xbd0   : > { %v1171_v42 = vadd.f32 %v2655_v40, %v1170_v41  ;;  %v2215_v43 = vpop.f32.mrb[29].mxu0 }
 0xbd1   : > { %v1173_v44 = vpop.f32.mrb[30].mxu0 }
 0xbd2   : > { %v2216_v45 = vpop.f32.mrb[31].mxu0  ;;  %v1176_v46 = vsel %vm329_vm2, %v1171_v42, -inf }
 0xbd3   : > { %1177 = vmax.xlane.f32.xlu0 %v1176_v46 }
 0xbd7   : > { %v1280_v47 = vpop.f32.mrb[32].mxu0 }
 0xbd8   : > { %v1281_v48 = vadd.f32 %v2655_v40, %v1280_v47  ;;  %v2227_v49 = vpop.f32.mrb[33].mxu0 }
 0xbd9   : > { %v1283_v50 = vpop.f32.mrb[34].mxu0 }
 0xbda   : > { %v2228_v51 = vpop.f32.mrb[35].mxu0  ;;  %v1286_v52 = vsel %vm329_vm2, %v1281_v48, -inf }
 0xbdb   : > { %1287 = vmax.xlane.f32.xlu1 %v1286_v52 }
 0xbdf   : > { %v1390_v53 = vpop.f32.mrb[36].mxu0 }
 0xbe0   : > { %v1391_v54 = vadd.f32 %v2655_v40, %v1390_v53  ;;  %v2239_v55 = vpop.f32.mrb[37].mxu0 }
 0xbe1   : > { %v1393_v56 = vpop.f32.mrb[38].mxu0  ;;  %v2362_v55 = vld [vmem:[%s2995_s2 + $0x60] sm:$0xff]  }
 0xbe2   : > { %v2240_v57 = vpop.f32.mrb[39].mxu0  ;;  %v1396_v58 = vsel %vm329_vm2, %v1391_v54, -inf  ;;  %2260 = vmatpush3.bf16.msra.mxu0 %v2362_v55  ;;  %v2363_v56 = vld [vmem:[%s2995_s2 + $0x68] sm:$0xff]  }
 0xbe3   : > { %1397 = vmax.xlane.f32.xlu0 %v1396_v58  ;;  %2261 = vmatprep.subr.bf16.mxu0 %v2484_v5 }
 0xbe6   : > { %2262 = vmatpush3.bf16.msra.mxu0 %v2363_v56  ;;  %v2042_v56 = vld [vmem:[%s2996_s3 + $0x10] ss:$0 sm:$0xff] }
 0xbe7   : > { %v1500_v59 = vpop.f32.mrb[40].mxu0  ;;  %2275 = vmatprep.subr.bf16.mxu0 %v2484_v5 }
 0xbe8   : > { %v1501_v60 = vadd.f32 %v2655_v40, %v1500_v59  ;;  %v2251_v61 = vpop.f32.mrb[41].mxu0 }
 0xbe9   : > { %v1503_v62 = vpop.f32.mrb[42].mxu0 }
 0xbea   : > { %v2252_v63 = vpop.f32.mrb[43].mxu0  ;;  %v1506_v0 = vsel %vm329_vm2, %v1501_v60, -inf }
 0xbeb   : > { %1507 = vmax.xlane.f32.xlu0 %v1506_v0 }
 0xc60   : > { %v1178_v1 = vpop.xlane.xlu0 %1177 }
 0xc61   : > { %v1179_v2 = vsub.f32 %v1171_v42, %v1178_v1 }
 0xc63   : > { %v1180_v3 = vmul.f32 1.442695, %v1179_v2 }
 0xc65   : > { %2396 = vpow2.f32 %v1180_v3 }
 0xc68   : > { %v1288_v4 = vpop.xlane.xlu1 %1287 }
 0xc69   : > { %v1289_v6 = vsub.f32 %v1281_v48, %v1288_v4 }
 0xc6b   : > { %v1290_v7 = vmul.f32 1.442695, %v1289_v6 }
 0xc6d   : > { %2398 = vpow2.f32 %v1290_v7 }
 0xc6f   : > { %v2397_v8 = vpop.eup %2396 }
 0xc70   : > { %v1182_v9 = vsel %vm329_vm2, %v2397_v8, 0.0  ;;  %v1398_v10 = vpop.xlane.xlu0 %1397 }
 0xc71   : > { %1183 = vadd.xlane.f32.xlu1 %v1182_v9  ;;  %v1399_v17 = vsub.f32 %v1391_v54, %v1398_v10  ;;  %v2032_v9 = vld [vmem:[%s2996_s3 + $0xc] ss:$0 sm:$0xff] }
 0xc73   : > { %v1400_v18 = vmul.f32 1.442695, %v1399_v17 }
 0xc77   : > { %v2399_v40 = vpop.eup %2398 }
 0xc78   : > { %v1508_v11 = vpop.xlane.xlu0 %1507  ;;  %v1292_v12 = vsel %vm329_vm2, %v2399_v40, 0.0 }
 0xc79   : > { %v1509_v13 = vsub.f32 %v1501_v60, %v1508_v11  ;;  %1293 = vadd.xlane.f32.xlu0 %v1292_v12 }
 0xc7b   : > { %v1510_v14 = vmul.f32 1.442695, %v1509_v13 }
 0xc7d   : > { %2400 = vpow2.f32 %v1510_v14 }
 0xc7e   : > { %2402 = vpow2.f32 %v1400_v18  ;;  %v2364_v18 = vld [vmem:[%s2995_s2 + $0x70] sm:$0xff]  }
 0xc82   : > { %1188 = vrot.lane.b32.xlu1 %v2788_v28, %s2493_s27  ;;  %s3007_s27 = smov 24  }
 0xc87   : > { %v2401_v15 = vpop.eup %2400 }
 0xc88   : > { %v1512_v16 = vsel %vm329_vm2, %v2401_v15, 0.0  ;;  %v2403_v19 = vpop.eup %2402 }
 0xc89   : > { %1513 = vadd.xlane.f32.xlu0 %v1512_v16  ;;  %v1402_v22 = vsel %vm329_vm2, %v2403_v19, 0.0 }
 0xc9f   : > { %1298 = vrot.lane.b32.xlu0 %v2788_v28, %s2494_s10 }
 0xca6   : > { %1403 = vadd.xlane.f32.xlu1 %v1402_v22 }
 0xcb7   : > { %1408 = vrot.lane.b32.xlu1 %v2788_v28, %s2495_s11 }
 0xcbb   : > { %1518 = vrot.lane.b32.xlu1 %v2788_v28, %s3004_s22 }
 0xcfe   : > { %v1184_v20 = vpop.xlane.xlu1 %1183 }
 0xcff   : > { %2404 = vrcp.f32 %v1184_v20 }
 0xd02   : > { %v1189_v23 = vpop.permute.xlu1 %1188 }
 0xd03   : > { %v1194_v24 = vsel %vm393_vm3, %v1189_v23, 0 }
 0xd04   : > { %2218 = vmatpush3.bf16.msra.mxu1 %v1194_v24 }
 0xd05   : > { %2229 = vmatprep.subr.bf16.mxu1 %v2484_v5 }
 0xd06   : > { %v1294_v26 = vpop.xlane.xlu0 %1293 }
 0xd07   : > { %2406 = vrcp.f32 %v1294_v26 }
 0xd09   : > { %v2405_v25 = vpop.eup %2404 }
 0xd0a   : > { %v1186_v29 = vmul.f32 %v2405_v25, %v2397_v8 }
 0xd0c   : > { %v1187_v30 = vpack.c.bf16 %v1186_v29, %v1186_v29 }
 0xd0e   : > { %2220 = vmatmul.mubr.msk.bf16.vlgmr.msra.gmra.mrb[24].mxu1 %vm329_vm2, %v1187_v30 }
 0xd0f   : > { %2231 = vmatprep.mubr.msk.bf16.mxu1 %vm2485_vm1, %v2484_v5 }
 0xd11   : > { %v2407_v27 = vpop.eup %2406 }
 0xd12   : > { %v1296_v31 = vmul.f32 %v2407_v27, %v2399_v40  ;;  %v2036_v27 = vld [vmem:[%s2996_s3 + $0xd] ss:$0 sm:$0xff] }
 0xd14   : > { %v1297_v34 = vpack.c.bf16 %v1296_v31, %v1296_v31  ;;  %v2037_v31 = vld [vmem:[%s2996_s3 + $0xe] ss:$0 sm:$0xff] }
 0xd16   : > { %v1514_v28 = vpop.xlane.xlu0 %1513 }
 0xd1a   : > { %v1299_v32 = vpop.permute.xlu0 %1298 }
 0xd1b   : > { %v1304_v33 = vsel %vm393_vm3, %v1299_v32, 0 }
 0xd1c   : > { %2230 = vmatpush3.bf16.msra.mxu1 %v1304_v33 }
 0xd1d   : > { %2241 = vmatprep.subr.bf16.mxu1 %v2484_v5 }
 0xd1f   : > { %2232 = vmatmul.mubr.msk.bf16.vlgmr.msra.gmra.mrb[28].mxu1 %vm329_vm2, %v1297_v34 }
 0xd20   : > { %2243 = vmatprep.mubr.msk.bf16.mxu1 %vm2485_vm1, %v2484_v5 }
 0xd33   : > { %v1404_v35 = vpop.xlane.xlu1 %1403 }
 0xd34   : > { %2408 = vrcp.f32 %v1404_v35  ;;  %v2366_v35 = vld [vmem:[%s2995_s2 + $0x80] sm:$0xff]  }
 0xd35   : > { %2410 = vrcp.f32 %v1514_v28 }
 0xd37   : > { %v1409_v36 = vpop.permute.xlu1 %1408 }
 0xd38   : > { %v1414_v37 = vsel %vm393_vm3, %v1409_v36, 0  ;;  %v2367_v36 = vld [vmem:[%s2995_s2 + $0x88] sm:$0xff]  }
 0xd39   : > { %2242 = vmatpush3.bf16.msra.mxu1 %v1414_v37  ;;  %v2368_v37 = vld [vmem:[%s2995_s2 + $0x90] sm:$0xff]  }
 0xd3a   : > { %2253 = vmatprep.subr.bf16.mxu1 %v2484_v5 }
 0xd3b   : > { %v1519_v41 = vpop.permute.xlu1 %1518 }
 0xd3c   : > { %v1524_v44 = vsel %vm393_vm3, %v1519_v41, 0 }
 0xd3e   : > { %v2409_v38 = vpop.eup %2408 }
 0xd3f   : > { %v1406_v39 = vmul.f32 %v2409_v38, %v2403_v19  ;;  %v2411_v43 = vpop.eup %2410  ;;  %v2365_v19 = vld [vmem:[%s2995_s2 + $0x78] sm:$0xff]  }
 0xd40   : > { %v1516_v45 = vmul.f32 %v2411_v43, %v2401_v15  ;;  %v2369_v38 = vld [vmem:[%s2995_s2 + $0x98] sm:$0xff]  }
 0xd41   : > { %v1407_v42 = vpack.c.bf16 %v1406_v39, %v1406_v39  ;;  %v2038_v39 = vld [vmem:[%s2996_s3 + $0xf] ss:$0 sm:$0xff] }
 0xd42   : > { %v1517_v46 = vpack.c.bf16 %v1516_v45, %v1516_v45 }
 0xd43   : > { %2244 = vmatmul.mubr.msk.bf16.vlgmr.msra.gmra.mrb[32].mxu1 %vm329_vm2, %v1407_v42 }
 0xd44   : > { %2254 = vmatpush3.bf16.msra.mxu1 %v1524_v44  ;;  %2255 = vmatprep.mubr.msk.bf16.mxu1 %vm2485_vm1, %v2484_v5 }
 0xd45   : > { %2267 = vmatprep.subr.bf16.mxu1 %v2484_v5 }
 0xd4b   : > { %2256 = vmatmul.mubr.msk.bf16.vlgmr.msra.gmra.mrb[36].mxu1 %vm329_vm2, %v1517_v46 }
 0xd4c   : > { %2271 = vmatprep.mubr.msk.bf16.mxu1 %vm2485_vm1, %v2484_v5  ;;  %2268 = vmatpush3.bf16.msra.mxu1 %v2364_v18  ;;  %v1846_v18 = vld [vmem:[%s2996_s3 + $0x2] sm:$0x1] }
 0xd4d   : > { %2269 = vmatprep.subr.bf16.mxu1 %v2484_v5 }
 0xd50   : > { %2270 = vmatpush3.bf16.msra.mxu1 %v2365_v19 }
 0xd51   : > { %2287 = vmatprep.subr.bf16.mxu1 %v2484_v5 }
 0xde1   : > { %v1230_v47 = vpop.f32.mrb[24].mxu1 }
 0xde2   : > { %v2221_v48 = vpop.f32.mrb[25].mxu1 }
 0xde3   : > { %v1233_v49 = vpop.f32.mrb[26].mxu1 }
 0xde4   : > { %v2222_v50 = vpop.f32.mrb[27].mxu1 }
 0xdf2   : > { %v1340_v51 = vpop.f32.mrb[28].mxu1 }
 0xdf3   : > { %1567 = vrot.lane.b32.xlu0 %v1340_v51, %s3005_s23  ;;  %v2233_v52 = vpop.f32.mrb[29].mxu1 }
 0xdf4   : > { %v1343_v53 = vpop.f32.mrb[30].mxu1 }
 0xdf5   : > { %v2234_v54 = vpop.f32.mrb[31].mxu1 }
 0xe16   : > { %v1450_v57 = vpop.f32.mrb[32].mxu1 }
 0xe17   : > { %1571 = vrot.lane.b32.xlu1 %v1450_v57, %s3006_s6  ;;  %v2245_v58 = vpop.f32.mrb[33].mxu1  ;;  %s197_s6 = sand.u32 1, %s2474_s16  }
 0xe18   : > { %v1453_v59 = vpop.f32.mrb[34].mxu1  ;;  %s198_s10 = scalar_lea.vmem [#allocation2], %s197_s6  ;;  %s1906_s8 = scalar_lea.sflag [#allocation3], %s197_s6 }
 0xe19   : > { %v2246_v60 = vpop.f32.mrb[35].mxu1  ;;  %s1918_s11 = sshll.u32 %s198_s10, 4  ;;  %s2953_s11 = int_to_ptr.vmem [resolvable:$true] %s1918_s11 }
 0xe1a   : > { %s2420_s20 = scalar_lea.vmem %s2953_s11, 16 }
 0xe1b   : > { %p2421_p11 = scmp.ne.s32.totalorder %s2953_s11, %s2420_s20 }
 0xe1d   : > { %p2422_p12 = pnand %p2421_p11, %p2564_p5 }
 0xe1e   : > { %v1560_v61 = vpop.f32.mrb[36].mxu1 }
 0xe1f   : > { %1575 = vrot.lane.b32.xlu0 %v1560_v61, %s3007_s27  ;;  %v2257_v62 = vpop.f32.mrb[37].mxu1  ;;  %s2053_s27 = sshll.u32 %s2547_s19, 4  ;;  %p2423_p13 = pneg %p2422_p12 }
 0xe20   : > { %v1563_v63 = vpop.f32.mrb[38].mxu1  ;;  %s2951_s12 = scalar_lea.hbm %s2997_s4, %s2053_s27  ;;  %s2500_s19 = smov [#allocation2]  }
 0xe21   : > { %v2258_v0 = vpop.f32.mrb[39].mxu1  ;;  %s2424_s7 = sshll.u32 %s2500_s19, 4  ;;  %s2425_s7 = int_to_ptr.vmem [resolvable:$false] %s2424_s7 }
 0xe22   : > { %s2426_s13 = scalar_lea.vmem %s2425_s7, 32  ;;  %p2427_p0 = scmp.lt.s32.totalorder %s2953_s11, %s2425_s7 }
 0xe23   : > { %p2428_p1 = scmp.lt.s32.totalorder %s2426_s13, %s2420_s20 }
 0xe25   : > { %p2429_p2 = por %p2428_p1, %p2427_p0 }
 0xe27   : > { %p2430_p3 = pnand %p2429_p2, %p2423_p13 }
 0xe65   : > { %v1568_v1 = vpop.permute.xlu0 %1567 }
 0xe66   : > { %v1578_v3 = vsel %vm329_vm2, %v1230_v47, %v1568_v1 }
 0xe89   : > { %v1572_v2 = vpop.permute.xlu1 %1571 }
 0xe8a   : > { %v1579_v4 = vsel %vm780_vm4, %v1578_v3, %v1572_v2  ;;  %v2370_v2 = vld [vmem:[%s2995_s2 + $0xa0] sm:$0xff]   ;;  %v2371_v3 = vld [vmem:[%s2995_s2 + $0xa8] sm:$0xff]  }
 0xe91   : > { %v1576_v6 = vpop.permute.xlu0 %1575 }
 0xe92   : > { %v1580_v7 = vsel %vm782_vm5, %v1579_v4, %v1576_v6 }
 0xe93   : > { %v1581_v8 = vpack.c.bf16 %v1580_v7, %v1580_v7 }
 0xe95   : > { %2264 = vmatmul.mubr.msk.bf16.vlgmr.msra.gmra.mrb[44].mxu0 %vm211_vm0, %v1581_v8 }
 0xe96   : > { %2283 = vmatprep.mubr.msk.bf16.mxu0 %vm2485_vm1, %v2484_v5  ;;  %2276 = vmatpush3.bf16.msra.mxu0 %v2366_v35 }
 0xe97   : > { %2277 = vmatprep.subr.bf16.mxu0 %v2484_v5 }
 0xe9a   : > { %2278 = vmatpush3.bf16.msra.mxu0 %v2367_v36 }
 0xe9b   : > { %2279 = vmatprep.subr.bf16.mxu0 %v2484_v5 }
 0xe9e   : > { %2280 = vmatpush3.bf16.msra.mxu0 %v2368_v37 }
 0xe9f   : > { %2281 = vmatprep.subr.bf16.mxu0 %v2484_v5 }
 0xea2   : > { %2282 = vmatpush3.bf16.msra.mxu0 %v2369_v38 }
 0xf68   : > { %v1636_v10 = vpop.f32.mrb[44].mxu0 }
 0xf69   : > { %v1637_v40 = vadd.f32 %v2032_v9, %v1636_v10  ;;  %v2265_v11 = vpop.f32.mrb[45].mxu0 }
 0xf6a   : > { %v1639_v12 = vpop.f32.mrb[46].mxu0 }
 0xf6b   : > { %v1642_v13 = vadd.f32 %v1637_v40, %v2778_v21  ;;  %v2266_v14 = vpop.f32.mrb[47].mxu0 }
 0xf6d   : > { %v1645_v15 = vsel %vm211_vm0, %v1642_v13, 0.0  ;;  %v1649_v16 = vmul.f32 %v1642_v13, %v1642_v13 }
 0xf6e   : > { %1646 = vadd.xlane.f32.xlu1 %v1645_v15 }
 0xf6f   : > { %v1650_v17 = vsel %vm211_vm0, %v1649_v16, 0.0 }
 0xf70   : > { %1651 = vadd.xlane.f32.xlu0 %v1650_v17 }
 0xffb   : > { %v1647_v21 = vpop.xlane.xlu1 %1646 }
 0xffc   : > { %v1648_v22 = vmul.f32 0.03125, %v1647_v21 }
 0xffd   : > { %v1652_v20 = vpop.xlane.xlu0 %1651 }
 0xffe   : > { %v1654_v23 = vmul.f32 %v1648_v22, %v1648_v22  ;;  %v1653_v24 = vmul.f32 0.03125, %v1652_v20  ;;  %v1656_v29 = vsub.f32 %v1642_v13, %v1648_v22  ;;  %v2048_v13 = vld [vmem:[%s2996_s3 + $0x11] ss:$0 sm:$0xff] }
0x1000   : > { %v1655_v25 = vsub.f32 %v1653_v24, %v1654_v23 }
0x1002   : > { %v1657_v26 = vadd.f32 1e-12, %v1655_v25 }
0x1004   : > { %2412 = vrsqrt.f32 %v1657_v26 }
0x100e   : > { %v2413_v30 = vpop.eup %2412 }
0x100f   : > { %v1659_v28 = vmul.f32 %v2413_v30, %v1656_v29 }
0x1011   : > { %v1664_v32 = vmul.f32 %v2036_v27, %v1659_v28 }
0x1013   : > { %v1669_v33 = vadd.f32 %v2037_v31, %v1664_v32 }
0x1015   : > { %v1670_v34 = vpack.c.bf16 %v1669_v33, %v1669_v33 }
0x1017   : > { %2272 = vmatmul.mubr.msk.bf16.vlgmr.msra.gmra.mrb[40].mxu1 %vm211_vm0, %v1670_v34 }
0x1018   : > { %2291 = vmatprep.mubr.msk.bf16.mxu1 %vm2485_vm1, %v2484_v5  ;;  %2288 = vmatpush3.bf16.msra.mxu1 %v2370_v2 }
0x1019   : > { %2289 = vmatprep.subr.bf16.mxu1 %v2484_v5  ;;  %v2049_v5 = vld [vmem:[%s2996_s3 + $0x12] ss:$0 sm:$0xff] }
0x101c   : > { %2290 = vmatpush3.bf16.msra.mxu1 %v2371_v3 }
0x10ea   : > { %v1725_v41 = vpop.f32.mrb[40].mxu1 }
0x10eb   : > { %v1726_v42 = vadd.f32 %v2038_v39, %v1725_v41  ;;  %v2273_v43 = vpop.f32.mrb[41].mxu1 }
0x10ec   : > { %v1728_v44 = vpop.f32.mrb[42].mxu1 }
0x10ed   : > { %v1731_v45 = vmul.f32 %v1726_v42, %v1726_v42  ;;  %v2274_v46 = vpop.f32.mrb[43].mxu1 }
0x10ef   : > { %v1732_v47 = vmul.f32 %v1731_v45, %v1726_v42 }
0x10f1   : > { %v1733_v48 = vmul.f32 0.044715, %v1732_v47 }
0x10f3   : > { %v1734_v49 = vadd.f32 %v1733_v48, %v1726_v42 }
0x10f5   : > { %v1735_v50 = vmul.f32 0.7978846, %v1734_v49 }
0x10f7   : > { %2414 = vtanh.f32 %v1735_v50 }
0x1101   : > { %v2415_v51 = vpop.eup %2414 }
0x1102   : > { %v1737_v52 = vadd.f32 1.0, %v2415_v51 }
0x1104   : > { %v1738_v53 = vmul.f32 0.5, %v1737_v52 }
0x1106   : > { %v1739_v54 = vmul.f32 %v1738_v53, %v1726_v42 }
0x1108   : > { %v1740_v55 = vpack.c.bf16 %v1739_v54, %v1739_v54 }
0x110a   : > { %2284 = vmatmul.mubr.msk.bf16.vlgmr.msra.gmra.mrb[48].mxu0 %vm973_vm6, %v1740_v55 }
0x11dd   : > { %v1807_v57 = vpop.f32.mrb[48].mxu0 }
0x11de   : > { %v1808_v58 = vadd.f32 %v2042_v56, %v1807_v57  ;;  %v2285_v59 = vpop.f32.mrb[49].mxu0 }
0x11df   : > { %v1810_v60 = vpop.f32.mrb[50].mxu0 }
0x11e0   : > { %v1813_v61 = vadd.f32 %v1808_v58, %v1669_v33  ;;  %v2286_v62 = vpop.f32.mrb[51].mxu0 }
0x11e2   : > { %v1816_v63 = vsel %vm211_vm0, %v1813_v61, 0.0  ;;  %v1820_v0 = vmul.f32 %v1813_v61, %v1813_v61 }
0x11e3   : > { %1817 = vadd.xlane.f32.xlu0 %v1816_v63 }
0x11e4   : > { %v1821_v1 = vsel %vm211_vm0, %v1820_v0, 0.0 }
0x11e5   : > { %1822 = vadd.xlane.f32.xlu1 %v1821_v1 }
0x1270   : > { %v1818_v4 = vpop.xlane.xlu0 %1817 }
0x1271   : > { %v1819_v6 = vmul.f32 0.03125, %v1818_v4 }
0x1272   : > { %v1823_v7 = vpop.xlane.xlu1 %1822 }
0x1273   : > { %v1825_v8 = vmul.f32 %v1819_v6, %v1819_v6  ;;  %v1824_v9 = vmul.f32 0.03125, %v1823_v7  ;;  %v1827_v11 = vsub.f32 %v1813_v61, %v1819_v6 }
0x1275   : > { %v1826_v10 = vsub.f32 %v1824_v9, %v1825_v8 }
0x1277   : > { %v1828_v40 = vadd.f32 1e-12, %v1826_v10 }
0x1279   : > { %2416 = vrsqrt.f32 %v1828_v40 }
0x1283   : > { %v2417_v12 = vpop.eup %2416 }
0x1284   : > { %v1830_v14 = vmul.f32 %v2417_v12, %v1827_v11 }
0x1286   : > { %v1835_v15 = vmul.f32 %v2048_v13, %v1830_v14 }
0x1288   : > { %v1840_v16 = vadd.f32 %v2049_v5, %v1835_v15 }
0x128a   : > { %v1845_v17 = vpack.c.bf16 %v1840_v16, %v1840_v16 }
0x128c   : > { %2292 = vmatmul.mubr.msk.bf16.vlgmr.msra.gmra.mrb[44].mxu1 %vm211_vm0, %v1845_v17 }
0x135f   : > { %v1896_v19 = vpop.f32.mrb[44].mxu1 }
0x1360   : > { %v1897_v21 = vadd.f32 %v1896_v19, %v1846_v18  ;;  %v2293_v22 = vpop.f32.mrb[45].mxu1 }
0x1361   : > { %v1899_v20 = vpop.f32.mrb[46].mxu1 }
0x1362   : > { %2418 = vtanh.f32 %v1897_v21  ;;  %v2294_v23 = vpop.f32.mrb[47].mxu1 }
0x136c   : > { %v2419_v24 = vpop.eup %2418 }
0x136d   : > { %1904 = vst.msk [vmem:[%s198_s10] sm:$0x1] %vm1903_vm7, %v2419_v24 }
0x136e   : > { %2433 = shalt.err (!%p2430_p3)
}
0x136f   : > { %s2434_s22 = scalar_lea.hbm %s2951_s12, 16  ;;  %s2438_s29 = scalar_lea.hbm %s2997_s4, 32 }
0x1370   : > { %p2435_p4 = scmp.ne.s32.totalorder %s2951_s12, %s2434_s22  ;;  %p2439_p9 = scmp.lt.u32.totalorder %s2951_s12, %s2997_s4 }
0x1371   : > { %p2440_p10 = scmp.lt.u32.totalorder %s2438_s29, %s2434_s22  ;;  %p2442_p12 = scmp.lt.u32.totalorder %s2434_s22, %s2951_s12 }
0x1372   : > { %p2436_p7 = pnand %p2435_p4, %p2564_p5 }
0x1373   : > { %p2441_p11 = por %p2440_p10, %p2439_p9 }
0x1374   : > { %p2437_p8 = pneg %p2436_p7 }
0x1375   : > { %p2443_p13 = por %p2442_p12, %p2441_p11 }
0x1377   : > { %p2444_p0 = pnand %p2443_p13, %p2437_p8 }
0x1379   : > { %2447 = shalt.err (!%p2444_p0)
}
0x137a   : > { %2295 = dma.vmem_to_hbm [thread:$0]  (%p2564_p5), %s2953_s11, 16, %s2951_s12, %s1906_s8  }
0x137b PF: > { %p2301_p1 = scmp.ge.s32.totalorder %s2482_s18, 2  ;;  %s1930_s6 = sand.u32 1, %s2470_s15  }
0x137c   : > { %s1931_s27 = scalar_lea.sflag [#allocation3], %s1930_s6 }
0x137d   : > { %p2298_p2 = pnand %p2301_p1, %p2568_p6 }
0x137f   : > { %2465 = dma.done.wait (!%p2298_p2), %s1931_s27, 16  }
0x1380   : > { %2467 = vsyncadd (!%p2298_p2), %s1931_s27, 4294967280  ;;  %p14_p3 = scmp.ge.s32.totalorder %s2551_s21, 4   ;;  %s3008_s15 = smov %s2474_s16 }
0x1381   : > { %s3009_s16 = smov %s2478_s17  ;;  %s3010_s17 = smov %s2562_s24 }
0x1382   : > { %s3011_s18 = smov %s2551_s21  ;;  %16 = sbr.rel (!%p14_p3) target bundleno = 3 (0x3), region = 74 }
0x1389   :  { %1935 = vsyncpa [#allocation3], 1 }
0x138a   :  { %1937 = vsyncpa [#allocation3 + $0x1], 1 }

</bundles_post_ra>
